<compile_context>
chip_gen: v6e
topology: v6e:2x2x1
jax: 0.10.0
libtpu: 0.0.40
codegen_flags: <defaults>
</compile_context>

<pallas_src>
import functools
import math

import jax
import jax.numpy as jnp
from jax import lax
from jax.experimental import pallas as pl
from jax.experimental.pallas import tpu as pltpu

_VMEM_LIMIT = 48 * 1024 * 1024  # safe on v5e/v6e (128 MiB) and v7x (64 MiB)


def _pick_tile(full, target, align):
    """Largest tile <= target that divides `full` and is a multiple of `align`.
    Falls back to the full extent (always a legal TPU block shape)."""
    if full <= target:
        return full
    t = (target // align) * align
    while t >= align:
        if full % t == 0:
            return t
        t -= align
    return full


# ----------------------------------------------------------------------------
# Fused Q/K/V projection:  [xq, xk, xv] @ [wq, wk, wv] + [bq, bk, bv]
# ----------------------------------------------------------------------------
def _qkv_proj_kernel(xq_ref, xk_ref, xv_ref, w_ref, b_ref, o_ref, acc_ref):
    @pl.when(pl.program_id(2) == 0)
    def _():
        acc_ref[...] = jnp.zeros_like(acc_ref)

    xq = xq_ref[...].astype(jnp.bfloat16)
    xk = xk_ref[...].astype(jnp.bfloat16)
    xv = xv_ref[...].astype(jnp.bfloat16)
    acc_ref[0] += jnp.dot(xq, w_ref[0], preferred_element_type=jnp.float32)
    acc_ref[1] += jnp.dot(xk, w_ref[1], preferred_element_type=jnp.float32)
    acc_ref[2] += jnp.dot(xv, w_ref[2], preferred_element_type=jnp.float32)

    @pl.when(pl.program_id(2) == pl.num_programs(2) - 1)
    def _():
        o_ref[...] = (acc_ref[...] + b_ref[...]).astype(o_ref.dtype)


def qkv_projection(xq, xk, xv, w_qkv, b_qkv):
    """xq/xk/xv: (M, K) f32; w_qkv: (3, K, N) bf16 [wq, wk, wv];
    b_qkv: (3, 1, N) f32. Returns (3, M, N) f32 stacked as [q, k, v]."""
    M, K = xq.shape
    N = w_qkv.shape[2]
    TM = _pick_tile(M, 256, 8)
    TN = _pick_tile(N, 256, 128)
    TK = _pick_tile(K, 512, 128)
    return pl.pallas_call(
        _qkv_proj_kernel,
        out_shape=jax.ShapeDtypeStruct((3, M, N), jnp.float32),
        grid=(M // TM, N // TN, K // TK),
        in_specs=[
            pl.BlockSpec((TM, TK), lambda m, n, k: (m, k)),
            pl.BlockSpec((TM, TK), lambda m, n, k: (m, k)),
            pl.BlockSpec((TM, TK), lambda m, n, k: (m, k)),
            pl.BlockSpec((3, TK, TN), lambda m, n, k: (0, k, n)),
            pl.BlockSpec((3, 1, TN), lambda m, n, k: (0, 0, n)),
        ],
        out_specs=pl.BlockSpec((3, TM, TN), lambda m, n, k: (0, m, n)),
        scratch_shapes=[pltpu.VMEM((3, TM, TN), jnp.float32)],
        compiler_params=pltpu.CompilerParams(
            dimension_semantics=("parallel", "parallel", "arbitrary"),
            vmem_limit_bytes=_VMEM_LIMIT),
    )(xq, xk, xv, w_qkv, b_qkv)


# ----------------------------------------------------------------------------
# Tiled linear:  x @ W + b   (used for the output projection fc)
# ----------------------------------------------------------------------------
def _linear_kernel(x_ref, w_ref, b_ref, o_ref, acc_ref):
    @pl.when(pl.program_id(2) == 0)
    def _():
        acc_ref[...] = jnp.zeros_like(acc_ref)

    acc_ref[...] += jnp.dot(x_ref[...].astype(jnp.bfloat16), w_ref[...],
                            preferred_element_type=jnp.float32)

    @pl.when(pl.program_id(2) == pl.num_programs(2) - 1)
    def _():
        o_ref[...] = (acc_ref[...] + b_ref[...]).astype(o_ref.dtype)


def linear(x, w_bf16, b):
    """x: (M, K) f32; w_bf16: (K, N) bf16; b: (N,) f32."""
    M, K = x.shape
    N = w_bf16.shape[1]
    TM = _pick_tile(M, 256, 8)
    TN = _pick_tile(N, 256, 128)
    TK = _pick_tile(K, 512, 128)
    return pl.pallas_call(
        _linear_kernel,
        out_shape=jax.ShapeDtypeStruct((M, N), jnp.float32),
        grid=(M // TM, N // TN, K // TK),
        in_specs=[
            pl.BlockSpec((TM, TK), lambda m, n, k: (m, k)),
            pl.BlockSpec((TK, TN), lambda m, n, k: (k, n)),
            pl.BlockSpec((1, TN), lambda m, n, k: (0, n)),
        ],
        out_specs=pl.BlockSpec((TM, TN), lambda m, n, k: (m, n)),
        scratch_shapes=[pltpu.VMEM((TM, TN), jnp.float32)],
        compiler_params=pltpu.CompilerParams(
            dimension_semantics=("parallel", "parallel", "arbitrary"),
            vmem_limit_bytes=_VMEM_LIMIT),
    )(x, w_bf16, b.reshape(1, N))


# ----------------------------------------------------------------------------
# Attention:  softmax(q k^T / sqrt(hd))  ->  score @ v
# Blocks arrive head-merged (rows, dim); heads are static lane slices.
# ----------------------------------------------------------------------------
def _attn_kernel(*refs, num_heads, head_dim, scale, has_mask):
    if has_mask:
        q_ref, k_ref, v_ref, m_ref, ans_ref, score_ref = refs
    else:
        q_ref, k_ref, v_ref, ans_ref, score_ref = refs
        m_ref = None

    q = q_ref[0, 0].astype(jnp.bfloat16)   # (TQ, dim)
    k = k_ref[0, 0].astype(jnp.bfloat16)   # (S,  dim)
    v = v_ref[0, 0].astype(jnp.bfloat16)   # (S,  dim)
    if has_mask:
        masked = m_ref[0] > 0               # (TQ, S)

    neg_big = jnp.float32(-1e20)
    outs = []
    for h in range(num_heads):              # static unroll over heads
        sl = slice(h * head_dim, (h + 1) * head_dim)
        q_h, k_h, v_h = q[:, sl], k[:, sl], v[:, sl]
        # q_h @ k_h^T on the MXU, f32 accumulation
        s = lax.dot_general(q_h, k_h, (((1,), (1,)), ((), ())),
                            preferred_element_type=jnp.float32) * scale
        if has_mask:
            s = jnp.where(masked, neg_big, s)
        # numerically-stable softmax (f32)
        s_max = jnp.max(s, axis=-1, keepdims=True)
        e = jnp.exp(s - s_max)
        p = e / jnp.sum(e, axis=-1, keepdims=True)        # (TQ, S)
        score_ref[0, h] = p.astype(score_ref.dtype)
        outs.append(jnp.dot(p.astype(jnp.bfloat16), v_h,
                            preferred_element_type=jnp.float32))
    # merge heads in-kernel -> single lane-dense (TQ, dim) store
    ans_ref[0] = jnp.concatenate(outs, axis=-1).astype(ans_ref.dtype)


def attention(qkv, mask_i32, num_heads):
    """qkv: (3, B, S, dim) f32 stacked [q, k, v] head-merged projections.
    mask_i32: (B, S, S) int32 or None (1 = masked out).
    Returns ans (B, S, dim) and score (B, num_heads, S, S)."""
    _, B, S, dim = qkv.shape
    head_dim = dim // num_heads
    scale = 1.0 / math.sqrt(head_dim)
    TQ = _pick_tile(S, 128, 8)
    has_mask = mask_i32 is not None

    kernel = functools.partial(_attn_kernel, num_heads=num_heads,
                               head_dim=head_dim, scale=scale,
                               has_mask=has_mask)

    in_specs = [
        pl.BlockSpec((1, 1, TQ, dim), lambda b, qi: (0, b, qi, 0)),  # q block
        pl.BlockSpec((1, 1, S, dim), lambda b, qi: (1, b, 0, 0)),    # full k
        pl.BlockSpec((1, 1, S, dim), lambda b, qi: (2, b, 0, 0)),    # full v
    ]
    args = [qkv, qkv, qkv]
    if has_mask:
        in_specs.append(pl.BlockSpec((1, TQ, S), lambda b, qi: (b, qi, 0)))
        args.append(mask_i32)

    ans, score = pl.pallas_call(
        kernel,
        out_shape=(
            jax.ShapeDtypeStruct((B, S, dim), jnp.float32),
            jax.ShapeDtypeStruct((B, num_heads, S, S), jnp.float32),
        ),
        grid=(B, S // TQ),
        in_specs=in_specs,
        out_specs=(
            pl.BlockSpec((1, TQ, dim), lambda b, qi: (b, qi, 0)),
            pl.BlockSpec((1, num_heads, TQ, S), lambda b, qi: (b, 0, qi, 0)),
        ),
        compiler_params=pltpu.CompilerParams(
            dimension_semantics=("parallel", "parallel"),
            vmem_limit_bytes=_VMEM_LIMIT),
    )(*args)
    return ans, score


# ----------------------------------------------------------------------------
# Module: parameters + forward
# ----------------------------------------------------------------------------
def init_mha_params(key, dim):
    """nn.Linear-style init: U(-1/sqrt(dim), 1/sqrt(dim)).
    Stores both raw f32 params (reference) and kernel-ready stacked bf16."""
    bound = 1.0 / math.sqrt(dim)
    keys = jax.random.split(key, 8)

    def lin(kw, kb):
        w = jax.random.uniform(kw, (dim, dim), jnp.float32, -bound, bound)
        b = jax.random.uniform(kb, (dim,), jnp.float32, -bound, bound)
        return w, b

    wq, bq = lin(keys[0], keys[1])
    wk, bk = lin(keys[2], keys[3])
    wv, bv = lin(keys[4], keys[5])
    wf, bf = lin(keys[6], keys[7])
    return {
        "wq": (wq, bq), "wk": (wk, bk), "wv": (wv, bv), "fc": (wf, bf),
        # kernel-ready: stacked weights in bf16 (MXU-native), biases in f32
        "w_qkv": jnp.stack([wq, wk, wv]).astype(jnp.bfloat16),
        "b_qkv": jnp.stack([bq, bk, bv]).reshape(3, 1, dim),
        "fc_w_bf16": wf.astype(jnp.bfloat16),
        "fc_b": bf,
    }


def multi_head_attention(params, k, q, v, num_heads=8, mask=None):
    """k, q, v: (b, seq, dim) f32; mask: optional bool (b, seq, seq).
    Returns (ans, score): ans (b, seq, dim), score (b, num_heads, seq, seq)."""
    b, seq, dim = k.shape
    M = b * seq

    proj = qkv_projection(q.reshape(M, dim), k.reshape(M, dim),
                          v.reshape(M, dim),
                          params["w_qkv"], params["b_qkv"])
    qkv = proj.reshape(3, b, seq, dim)          # metadata-only reshape

    mask_i32 = None if mask is None else mask.astype(jnp.int32)
    ans, score = attention(qkv, mask_i32, num_heads)

    ans = linear(ans.reshape(M, dim), params["fc_w_bf16"],
                 params["fc_b"]).reshape(b, seq, dim)
    return ans, score


# ----------------------------------------------------------------------------
# Pure-JAX f32 reference (mirrors the PyTorch module)
# ----------------------------------------------------------------------------
def mha_reference(params, k, q, v, num_heads, mask=None):
    b, seq, dim = k.shape
    hd = dim // num_heads

    def lin(x, wb):
        w, bias = wb
        return x @ w + bias

    kp, qp, vp = lin(k, params["wk"]), lin(q, params["wq"]), lin(v, params["wv"])

    def split(x):
        return x.reshape(b, seq, num_heads, hd).transpose(0, 2, 1, 3)

    kh, qh, vh = split(kp), split(qp), split(vp)
    s = jnp.einsum("bhqd,bhkd->bhqk", qh, kh) / math.sqrt(hd)
    if mask is not None:
        s = jnp.where(mask[:, None, :, :], jnp.float32(-1e20), s)
    p = jax.nn.softmax(s, axis=-1)
    o = jnp.einsum("bhqk,bhkd->bhqd", p, vh).transpose(0, 2, 1, 3)
    o = lin(o.reshape(b, seq, dim), params["fc"])
    return o, p


if __name__ == "__main__":
    B, SEQ, DIM, HEADS = 2, 8, 32, 8

    root = jax.random.PRNGKey(0)
    kp_key, kk, kq, kv = jax.random.split(root, 4)

    params = init_mha_params(kp_key, DIM)
    k_in = jax.random.normal(kk, (B, SEQ, DIM), jnp.float32)
    q_in = jax.random.normal(kq, (B, SEQ, DIM), jnp.float32)
    v_in = jax.random.normal(kv, (B, SEQ, DIM), jnp.float32)

    mha = jax.jit(functools.partial(multi_head_attention, num_heads=HEADS))

    # --- unmasked path ---
    ans, score = mha(params, k_in, q_in, v_in)
    jax.block_until_ready((ans, score))
    assert ans.shape == (B, SEQ, DIM)
    assert score.shape == (B, HEADS, SEQ, SEQ)
    assert bool(jnp.allclose(jnp.sum(score, axis=-1), 1.0, atol=1e-5))
    ans_ref, score_ref = mha_reference(params, k_in, q_in, v_in, HEADS)
    assert bool(jnp.allclose(score, score_ref, atol=0.1))   # bf16 MXU tolerance
    assert bool(jnp.allclose(ans, ans_ref, atol=0.2))

    # --- masked path (causal mask; True = masked out) ---
    causal_mask = jnp.broadcast_to(
        ~jnp.tril(jnp.ones((SEQ, SEQ), dtype=bool)), (B, SEQ, SEQ))
    ans_m, score_m = mha(params, k_in, q_in, v_in, mask=causal_mask)
    jax.block_until_ready((ans_m, score_m))
    assert bool(jnp.allclose(jnp.sum(score_m, axis=-1), 1.0, atol=1e-5))
    ans_mr, score_mr = mha_reference(params, k_in, q_in, v_in, HEADS, causal_mask)
    assert bool(jnp.allclose(score_m, score_mr, atol=0.1))
    assert bool(jnp.allclose(ans_m, ans_mr, atol=0.2))
    # masked (future) positions must be exactly zero after softmax
    assert bool(jnp.all(jnp.where(causal_mask[:, None, :, :], score_m, 0.0) == 0.0))

    print("KERNEL_OK")
</pallas_src>

<mosaic_0001>
module attributes {stable_mosaic.version = 11 : i64} {
  func.func @_qkv_proj_kernel(%arg0: i32, %arg1: i32, %arg2: i32, %arg3: memref<16x32xf32, #tpu.memory_space<vmem>>, %arg4: memref<16x32xf32, #tpu.memory_space<vmem>>, %arg5: memref<16x32xf32, #tpu.memory_space<vmem>>, %arg6: memref<3x32x32xbf16, #tpu.memory_space<vmem>>, %arg7: memref<3x1x32xf32, #tpu.memory_space<vmem>>, %arg8: memref<3x16x32xf32, #tpu.memory_space<vmem>>, %arg9: memref<3x16x32xf32, #tpu.memory_space<vmem>>) attributes {dimension_semantics = [#tpu.dimension_semantics<parallel>, #tpu.dimension_semantics<parallel>, #tpu.dimension_semantics<arbitrary>], iteration_bounds = array<i64: 1, 1, 1>, scalar_prefetch = 0 : i64, scratch_operands = 1 : i64, tpu.core_type = #tpu.core_type<tc>, window_params = [{transform_indices = @transform_0, window_bounds = array<i64: 16, 32>}, {transform_indices = @transform_1, window_bounds = array<i64: 16, 32>}, {transform_indices = @transform_2, window_bounds = array<i64: 16, 32>}, {transform_indices = @transform_3, window_bounds = array<i64: 3, 32, 32>}, {transform_indices = @transform_4, window_bounds = array<i64: 3, 1, 32>}, {transform_indices = @transform_5, window_bounds = array<i64: 3, 16, 32>}]} {
    %c0_i32 = arith.constant 0 : i32
    %0 = arith.cmpi eq, %arg2, %c0_i32 : i32
    %1 = arith.extui %0 : i1 to i32
    %c0_i32_0 = arith.constant 0 : i32
    %2 = arith.cmpi ne, %1, %c0_i32_0 : i32
    scf.if %2 {
      %cst_35 = arith.constant 0.000000e+00 : f32
      %39 = vector.broadcast %cst_35 : f32 to vector<3x16x32xf32>
      %c0_36 = arith.constant 0 : index
      %c0_37 = arith.constant 0 : index
      %c0_38 = arith.constant 0 : index
      %40 = vector.load %arg9[%c0_36, %c0_37, %c0_38] : memref<3x16x32xf32, #tpu.memory_space<vmem>>, vector<3x16x32xf32>
      tpu.vector_store %arg9[%c0_36, %c0_37, %c0_38], %39 {strides = array<i32>} : memref<3x16x32xf32, #tpu.memory_space<vmem>>, vector<3x16x32xf32>,
    } else {
    }
    %c0 = arith.constant 0 : index
    %c0_1 = arith.constant 0 : index
    %3 = vector.load %arg3[%c0, %c0_1] : memref<16x32xf32, #tpu.memory_space<vmem>>, vector<16x32xf32>
    %4 = arith.truncf %3 : vector<16x32xf32> to vector<16x32xbf16>
    %c0_2 = arith.constant 0 : index
    %c0_3 = arith.constant 0 : index
    %5 = vector.load %arg4[%c0_2, %c0_3] : memref<16x32xf32, #tpu.memory_space<vmem>>, vector<16x32xf32>
    %6 = arith.truncf %5 : vector<16x32xf32> to vector<16x32xbf16>
    %c0_4 = arith.constant 0 : index
    %c0_5 = arith.constant 0 : index
    %7 = vector.load %arg5[%c0_4, %c0_5] : memref<16x32xf32, #tpu.memory_space<vmem>>, vector<16x32xf32>
    %8 = arith.truncf %7 : vector<16x32xf32> to vector<16x32xbf16>
    %c0_6 = arith.constant 0 : index
    %c0_7 = arith.constant 0 : index
    %c0_8 = arith.constant 0 : index
    %9 = vector.load %arg9[%c0_6, %c0_7, %c0_8] : memref<3x16x32xf32, #tpu.memory_space<vmem>>, vector<1x16x32xf32>
    %10 = vector.shape_cast %9 : vector<1x16x32xf32> to vector<16x32xf32>
    %c0_9 = arith.constant 0 : index
    %c0_10 = arith.constant 0 : index
    %c0_11 = arith.constant 0 : index
    %11 = vector.load %arg6[%c0_9, %c0_10, %c0_11] : memref<3x32x32xbf16, #tpu.memory_space<vmem>>, vector<1x32x32xbf16>
    %12 = vector.shape_cast %11 : vector<1x32x32xbf16> to vector<32x32xbf16>
    %cst = arith.constant dense<0.000000e+00> : vector<16x32xf32>
    %13 = tpu.matmul %4, %12, %cst {dimension_numbers = #tpu.dot_dimension_numbers<[1], [0], [0], [1], [0, 0, 1, 1], [], []>} : vector<16x32xbf16>, vector<32x32xbf16>, vector<16x32xf32> -> vector<16x32xf32>
    %14 = arith.addf %10, %13 : vector<16x32xf32>
    %c0_12 = arith.constant 0 : index
    %c0_13 = arith.constant 0 : index
    %c0_14 = arith.constant 0 : index
    %15 = vector.load %arg9[%c0_12, %c0_13, %c0_14] : memref<3x16x32xf32, #tpu.memory_space<vmem>>, vector<1x16x32xf32>
    %16 = vector.shape_cast %15 : vector<1x16x32xf32> to vector<16x32xf32>
    %17 = vector.shape_cast %14 : vector<16x32xf32> to vector<1x16x32xf32>
    tpu.vector_store %arg9[%c0_12, %c0_13, %c0_14], %17 {strides = array<i32>} : memref<3x16x32xf32, #tpu.memory_space<vmem>>, vector<1x16x32xf32>,
    %c1 = arith.constant 1 : index
    %c0_15 = arith.constant 0 : index
    %c0_16 = arith.constant 0 : index
    %18 = vector.load %arg9[%c1, %c0_15, %c0_16] : memref<3x16x32xf32, #tpu.memory_space<vmem>>, vector<1x16x32xf32>
    %19 = vector.shape_cast %18 : vector<1x16x32xf32> to vector<16x32xf32>
    %c1_17 = arith.constant 1 : index
    %c0_18 = arith.constant 0 : index
    %c0_19 = arith.constant 0 : index
    %20 = vector.load %arg6[%c1_17, %c0_18, %c0_19] : memref<3x32x32xbf16, #tpu.memory_space<vmem>>, vector<1x32x32xbf16>
    %21 = vector.shape_cast %20 : vector<1x32x32xbf16> to vector<32x32xbf16>
    %cst_20 = arith.constant dense<0.000000e+00> : vector<16x32xf32>
    %22 = tpu.matmul %6, %21, %cst_20 {dimension_numbers = #tpu.dot_dimension_numbers<[1], [0], [0], [1], [0, 0, 1, 1], [], []>} : vector<16x32xbf16>, vector<32x32xbf16>, vector<16x32xf32> -> vector<16x32xf32>
    %23 = arith.addf %19, %22 : vector<16x32xf32>
    %c1_21 = arith.constant 1 : index
    %c0_22 = arith.constant 0 : index
    %c0_23 = arith.constant 0 : index
    %24 = vector.load %arg9[%c1_21, %c0_22, %c0_23] : memref<3x16x32xf32, #tpu.memory_space<vmem>>, vector<1x16x32xf32>
    %25 = vector.shape_cast %24 : vector<1x16x32xf32> to vector<16x32xf32>
    %26 = vector.shape_cast %23 : vector<16x32xf32> to vector<1x16x32xf32>
    tpu.vector_store %arg9[%c1_21, %c0_22, %c0_23], %26 {strides = array<i32>} : memref<3x16x32xf32, #tpu.memory_space<vmem>>, vector<1x16x32xf32>,
    %c2 = arith.constant 2 : index
    %c0_24 = arith.constant 0 : index
    %c0_25 = arith.constant 0 : index
    %27 = vector.load %arg9[%c2, %c0_24, %c0_25] : memref<3x16x32xf32, #tpu.memory_space<vmem>>, vector<1x16x32xf32>
    %28 = vector.shape_cast %27 : vector<1x16x32xf32> to vector<16x32xf32>
    %c2_26 = arith.constant 2 : index
    %c0_27 = arith.constant 0 : index
    %c0_28 = arith.constant 0 : index
    %29 = vector.load %arg6[%c2_26, %c0_27, %c0_28] : memref<3x32x32xbf16, #tpu.memory_space<vmem>>, vector<1x32x32xbf16>
    %30 = vector.shape_cast %29 : vector<1x32x32xbf16> to vector<32x32xbf16>
    %cst_29 = arith.constant dense<0.000000e+00> : vector<16x32xf32>
    %31 = tpu.matmul %8, %30, %cst_29 {dimension_numbers = #tpu.dot_dimension_numbers<[1], [0], [0], [1], [0, 0, 1, 1], [], []>} : vector<16x32xbf16>, vector<32x32xbf16>, vector<16x32xf32> -> vector<16x32xf32>
    %32 = arith.addf %28, %31 : vector<16x32xf32>
    %c2_30 = arith.constant 2 : index
    %c0_31 = arith.constant 0 : index
    %c0_32 = arith.constant 0 : index
    %33 = vector.load %arg9[%c2_30, %c0_31, %c0_32] : memref<3x16x32xf32, #tpu.memory_space<vmem>>, vector<1x16x32xf32>
    %34 = vector.shape_cast %33 : vector<1x16x32xf32> to vector<16x32xf32>
    %35 = vector.shape_cast %32 : vector<16x32xf32> to vector<1x16x32xf32>
    tpu.vector_store %arg9[%c2_30, %c0_31, %c0_32], %35 {strides = array<i32>} : memref<3x16x32xf32, #tpu.memory_space<vmem>>, vector<1x16x32xf32>,
    %c0_i32_33 = arith.constant 0 : i32
    %36 = arith.cmpi eq, %arg2, %c0_i32_33 : i32
    %37 = arith.extui %36 : i1 to i32
    %c0_i32_34 = arith.constant 0 : i32
    %38 = arith.cmpi ne, %37, %c0_i32_34 : i32
    scf.if %38 {
      %c0_35 = arith.constant 0 : index
      %c0_36 = arith.constant 0 : index
      %c0_37 = arith.constant 0 : index
      %39 = vector.load %arg9[%c0_35, %c0_36, %c0_37] : memref<3x16x32xf32, #tpu.memory_space<vmem>>, vector<3x16x32xf32>
      %c0_38 = arith.constant 0 : index
      %c0_39 = arith.constant 0 : index
      %c0_40 = arith.constant 0 : index
      %40 = vector.load %arg7[%c0_38, %c0_39, %c0_40] : memref<3x1x32xf32, #tpu.memory_space<vmem>>, vector<3x1x32xf32>
      %41 = vector.broadcast %40 : vector<3x1x32xf32> to vector<3x16x32xf32>
      %42 = arith.addf %39, %41 : vector<3x16x32xf32>
      %c0_41 = arith.constant 0 : index
      %c0_42 = arith.constant 0 : index
      %c0_43 = arith.constant 0 : index
      %43 = vector.load %arg8[%c0_41, %c0_42, %c0_43] : memref<3x16x32xf32, #tpu.memory_space<vmem>>, vector<3x16x32xf32>
      tpu.vector_store %arg8[%c0_41, %c0_42, %c0_43], %42 {strides = array<i32>} : memref<3x16x32xf32, #tpu.memory_space<vmem>>, vector<3x16x32xf32>,
    } else {
    }
    return
  }
  func.func @transform_0(%arg0: i32, %arg1: i32, %arg2: i32) -> (i32, i32) {
    %c0_i32 = arith.constant 0 : i32
    return %arg0, %arg2 : i32, i32
  }
  func.func @transform_1(%arg0: i32, %arg1: i32, %arg2: i32) -> (i32, i32) {
    %c0_i32 = arith.constant 0 : i32
    return %arg0, %arg2 : i32, i32
  }
  func.func @transform_2(%arg0: i32, %arg1: i32, %arg2: i32) -> (i32, i32) {
    %c0_i32 = arith.constant 0 : i32
    return %arg0, %arg2 : i32, i32
  }
  func.func @transform_3(%arg0: i32, %arg1: i32, %arg2: i32) -> (i32, i32, i32) {
    %c0_i32 = arith.constant 0 : i32
    %c0_i32_0 = arith.constant 0 : i32
    return %c0_i32, %arg2, %arg1 : i32, i32, i32
  }
  func.func @transform_4(%arg0: i32, %arg1: i32, %arg2: i32) -> (i32, i32, i32) {
    %c0_i32 = arith.constant 0 : i32
    %c0_i32_0 = arith.constant 0 : i32
    %c0_i32_1 = arith.constant 0 : i32
    return %c0_i32, %c0_i32_0, %arg1 : i32, i32, i32
  }
  func.func @transform_5(%arg0: i32, %arg1: i32, %arg2: i32) -> (i32, i32, i32) {
    %c0_i32 = arith.constant 0 : i32
    %c0_i32_0 = arith.constant 0 : i32
    return %c0_i32, %arg0, %arg1 : i32, i32, i32
  }
}

module attributes {stable_mosaic.version = 11 : i64} {
  func.func @_linear_kernel(%arg0: i32, %arg1: i32, %arg2: i32, %arg3: memref<16x32xf32, #tpu.memory_space<vmem>>, %arg4: memref<32x32xbf16, #tpu.memory_space<vmem>>, %arg5: memref<1x32xf32, #tpu.memory_space<vmem>>, %arg6: memref<16x32xf32, #tpu.memory_space<vmem>>, %arg7: memref<16x32xf32, #tpu.memory_space<vmem>>) attributes {dimension_semantics = [#tpu.dimension_semantics<parallel>, #tpu.dimension_semantics<parallel>, #tpu.dimension_semantics<arbitrary>], iteration_bounds = array<i64: 1, 1, 1>, scalar_prefetch = 0 : i64, scratch_operands = 1 : i64, tpu.core_type = #tpu.core_type<tc>, window_params = [{transform_indices = @transform_0, window_bounds = array<i64: 16, 32>}, {transform_indices = @transform_1, window_bounds = array<i64: 32, 32>}, {transform_indices = @transform_2, window_bounds = array<i64: 1, 32>}, {transform_indices = @transform_3, window_bounds = array<i64: 16, 32>}]} {
    %c0_i32 = arith.constant 0 : i32
    %0 = arith.cmpi eq, %arg2, %c0_i32 : i32
    %1 = arith.extui %0 : i1 to i32
    %c0_i32_0 = arith.constant 0 : i32
    %2 = arith.cmpi ne, %1, %c0_i32_0 : i32
    scf.if %2 {
      %cst_10 = arith.constant 0.000000e+00 : f32
      %13 = vector.broadcast %cst_10 : f32 to vector<16x32xf32>
      %c0_11 = arith.constant 0 : index
      %c0_12 = arith.constant 0 : index
      %14 = vector.load %arg7[%c0_11, %c0_12] : memref<16x32xf32, #tpu.memory_space<vmem>>, vector<16x32xf32>
      tpu.vector_store %arg7[%c0_11, %c0_12], %13 {strides = array<i32>} : memref<16x32xf32, #tpu.memory_space<vmem>>, vector<16x32xf32>,
    } else {
    }
    %c0 = arith.constant 0 : index
    %c0_1 = arith.constant 0 : index
    %3 = vector.load %arg7[%c0, %c0_1] : memref<16x32xf32, #tpu.memory_space<vmem>>, vector<16x32xf32>
    %c0_2 = arith.constant 0 : index
    %c0_3 = arith.constant 0 : index
    %4 = vector.load %arg3[%c0_2, %c0_3] : memref<16x32xf32, #tpu.memory_space<vmem>>, vector<16x32xf32>
    %5 = arith.truncf %4 : vector<16x32xf32> to vector<16x32xbf16>
    %c0_4 = arith.constant 0 : index
    %c0_5 = arith.constant 0 : index
    %6 = vector.load %arg4[%c0_4, %c0_5] : memref<32x32xbf16, #tpu.memory_space<vmem>>, vector<32x32xbf16>
    %cst = arith.constant dense<0.000000e+00> : vector<16x32xf32>
    %7 = tpu.matmul %5, %6, %cst {dimension_numbers = #tpu.dot_dimension_numbers<[1], [0], [0], [1], [0, 0, 1, 1], [], []>} : vector<16x32xbf16>, vector<32x32xbf16>, vector<16x32xf32> -> vector<16x32xf32>
    %8 = arith.addf %3, %7 : vector<16x32xf32>
    %c0_6 = arith.constant 0 : index
    %c0_7 = arith.constant 0 : index
    %9 = vector.load %arg7[%c0_6, %c0_7] : memref<16x32xf32, #tpu.memory_space<vmem>>, vector<16x32xf32>
    tpu.vector_store %arg7[%c0_6, %c0_7], %8 {strides = array<i32>} : memref<16x32xf32, #tpu.memory_space<vmem>>, vector<16x32xf32>,
    %c0_i32_8 = arith.constant 0 : i32
    %10 = arith.cmpi eq, %arg2, %c0_i32_8 : i32
    %11 = arith.extui %10 : i1 to i32
    %c0_i32_9 = arith.constant 0 : i32
    %12 = arith.cmpi ne, %11, %c0_i32_9 : i32
    scf.if %12 {
      %c0_10 = arith.constant 0 : index
      %c0_11 = arith.constant 0 : index
      %13 = vector.load %arg7[%c0_10, %c0_11] : memref<16x32xf32, #tpu.memory_space<vmem>>, vector<16x32xf32>
      %c0_12 = arith.constant 0 : index
      %c0_13 = arith.constant 0 : index
      %14 = vector.load %arg5[%c0_12, %c0_13] : memref<1x32xf32, #tpu.memory_space<vmem>>, vector<1x32xf32>
      %15 = vector.broadcast %14 : vector<1x32xf32> to vector<16x32xf32>
      %16 = arith.addf %13, %15 : vector<16x32xf32>
      %c0_14 = arith.constant 0 : index
      %c0_15 = arith.constant 0 : index
      %17 = vector.load %arg6[%c0_14, %c0_15] : memref<16x32xf32, #tpu.memory_space<vmem>>, vector<16x32xf32>
      tpu.vector_store %arg6[%c0_14, %c0_15], %16 {strides = array<i32>} : memref<16x32xf32, #tpu.memory_space<vmem>>, vector<16x32xf32>,
    } else {
    }
    return
  }
  func.func @transform_0(%arg0: i32, %arg1: i32, %arg2: i32) -> (i32, i32) {
    %c0_i32 = arith.constant 0 : i32
    return %arg0, %arg2 : i32, i32
  }
  func.func @transform_1(%arg0: i32, %arg1: i32, %arg2: i32) -> (i32, i32) {
    %c0_i32 = arith.constant 0 : i32
    return %arg2, %arg1 : i32, i32
  }
  func.func @transform_2(%arg0: i32, %arg1: i32, %arg2: i32) -> (i32, i32) {
    %c0_i32 = arith.constant 0 : i32
    %c0_i32_0 = arith.constant 0 : i32
    return %c0_i32, %arg1 : i32, i32
  }
  func.func @transform_3(%arg0: i32, %arg1: i32, %arg2: i32) -> (i32, i32) {
    %c0_i32 = arith.constant 0 : i32
    return %arg0, %arg1 : i32, i32
  }
}

module attributes {stable_mosaic.version = 11 : i64} {
  func.func @_attn_kernel(%arg0: i32, %arg1: i32, %arg2: memref<1x1x8x32xf32, #tpu.memory_space<vmem>>, %arg3: memref<1x1x8x32xf32, #tpu.memory_space<vmem>>, %arg4: memref<1x1x8x32xf32, #tpu.memory_space<vmem>>, %arg5: memref<1x8x32xf32, #tpu.memory_space<vmem>>, %arg6: memref<1x8x8x8xf32, #tpu.memory_space<vmem>>) attributes {dimension_semantics = [#tpu.dimension_semantics<parallel>, #tpu.dimension_semantics<parallel>], iteration_bounds = array<i64: 2, 1>, scalar_prefetch = 0 : i64, scratch_operands = 0 : i64, tpu.core_type = #tpu.core_type<tc>, window_params = [{transform_indices = @transform_0, window_bounds = array<i64: 1, 1, 8, 32>}, {transform_indices = @transform_1, window_bounds = array<i64: 1, 1, 8, 32>}, {transform_indices = @transform_2, window_bounds = array<i64: 1, 1, 8, 32>}, {transform_indices = @transform_3, window_bounds = array<i64: 1, 8, 32>}, {transform_indices = @transform_4, window_bounds = array<i64: 1, 8, 8, 8>}]} {
    %c0 = arith.constant 0 : index
    %c0_0 = arith.constant 0 : index
    %c0_1 = arith.constant 0 : index
    %c0_2 = arith.constant 0 : index
    %0 = vector.load %arg2[%c0, %c0_0, %c0_1, %c0_2] : memref<1x1x8x32xf32, #tpu.memory_space<vmem>>, vector<1x1x8x32xf32>
    %1 = vector.shape_cast %0 : vector<1x1x8x32xf32> to vector<8x32xf32>
    %2 = arith.truncf %1 : vector<8x32xf32> to vector<8x32xbf16>
    %c0_3 = arith.constant 0 : index
    %c0_4 = arith.constant 0 : index
    %c0_5 = arith.constant 0 : index
    %c0_6 = arith.constant 0 : index
    %3 = vector.load %arg3[%c0_3, %c0_4, %c0_5, %c0_6] : memref<1x1x8x32xf32, #tpu.memory_space<vmem>>, vector<1x1x8x32xf32>
    %4 = vector.shape_cast %3 : vector<1x1x8x32xf32> to vector<8x32xf32>
    %5 = arith.truncf %4 : vector<8x32xf32> to vector<8x32xbf16>
    %c0_7 = arith.constant 0 : index
    %c0_8 = arith.constant 0 : index
    %c0_9 = arith.constant 0 : index
    %c0_10 = arith.constant 0 : index
    %6 = vector.load %arg4[%c0_7, %c0_8, %c0_9, %c0_10] : memref<1x1x8x32xf32, #tpu.memory_space<vmem>>, vector<1x1x8x32xf32>
    %7 = vector.shape_cast %6 : vector<1x1x8x32xf32> to vector<8x32xf32>
    %8 = arith.truncf %7 : vector<8x32xf32> to vector<8x32xbf16>
    %9 = vector.extract_strided_slice %2 {offsets = [0, 0], sizes = [8, 4], strides = [1, 1]} : vector<8x32xbf16> to vector<8x4xbf16>
    %10 = vector.extract_strided_slice %5 {offsets = [0, 0], sizes = [8, 4], strides = [1, 1]} : vector<8x32xbf16> to vector<8x4xbf16>
    %11 = vector.extract_strided_slice %8 {offsets = [0, 0], sizes = [8, 4], strides = [1, 1]} : vector<8x32xbf16> to vector<8x4xbf16>
    %cst = arith.constant dense<0.000000e+00> : vector<8x8xf32>
    %12 = tpu.matmul %9, %10, %cst {dimension_numbers = #tpu.dot_dimension_numbers<[1], [1], [0], [0], [0, 0, 1, 0], [], []>} : vector<8x4xbf16>, vector<8x4xbf16>, vector<8x8xf32> -> vector<8x8xf32>
    %cst_11 = arith.constant 5.000000e-01 : f32
    %13 = vector.broadcast %cst_11 : f32 to vector<8x8xf32>
    %14 = arith.mulf %12, %13 : vector<8x8xf32>
    %cst_12 = arith.constant dense<0xFF800000> : vector<8xf32>
    %15 = vector.multi_reduction <maximumf>, %14, %cst_12 [1] : vector<8x8xf32> to vector<8xf32>
    %16 = vector.shape_cast %15 : vector<8xf32> to vector<8x1xf32>
    %17 = vector.broadcast %16 : vector<8x1xf32> to vector<8x8xf32>
    %18 = arith.subf %14, %17 : vector<8x8xf32>
    %19 = math.exp %18 : vector<8x8xf32>
    %cst_13 = arith.constant dense<0.000000e+00> : vector<8xf32>
    %20 = vector.multi_reduction <add>, %19, %cst_13 [1] : vector<8x8xf32> to vector<8xf32>
    %21 = vector.shape_cast %20 : vector<8xf32> to vector<8x1xf32>
    %22 = vector.broadcast %21 : vector<8x1xf32> to vector<8x8xf32>
    %23 = arith.divf %19, %22 : vector<8x8xf32>
    %c0_14 = arith.constant 0 : index
    %c0_15 = arith.constant 0 : index
    %c0_16 = arith.constant 0 : index
    %c0_17 = arith.constant 0 : index
    %24 = vector.load %arg6[%c0_14, %c0_15, %c0_16, %c0_17] : memref<1x8x8x8xf32, #tpu.memory_space<vmem>>, vector<1x1x8x8xf32>
    %25 = vector.shape_cast %24 : vector<1x1x8x8xf32> to vector<8x8xf32>
    %26 = vector.shape_cast %23 : vector<8x8xf32> to vector<1x1x8x8xf32>
    tpu.vector_store %arg6[%c0_14, %c0_15, %c0_16, %c0_17], %26 {strides = array<i32>} : memref<1x8x8x8xf32, #tpu.memory_space<vmem>>, vector<1x1x8x8xf32>,
    %27 = arith.truncf %23 : vector<8x8xf32> to vector<8x8xbf16>
    %cst_18 = arith.constant dense<0.000000e+00> : vector<8x4xf32>
    %28 = tpu.matmul %27, %11, %cst_18 {dimension_numbers = #tpu.dot_dimension_numbers<[1], [0], [0], [1], [0, 0, 1, 1], [], []>} : vector<8x8xbf16>, vector<8x4xbf16>, vector<8x4xf32> -> vector<8x4xf32>
    %29 = vector.extract_strided_slice %2 {offsets = [0, 4], sizes = [8, 4], strides = [1, 1]} : vector<8x32xbf16> to vector<8x4xbf16>
    %30 = vector.extract_strided_slice %5 {offsets = [0, 4], sizes = [8, 4], strides = [1, 1]} : vector<8x32xbf16> to vector<8x4xbf16>
    %31 = vector.extract_strided_slice %8 {offsets = [0, 4], sizes = [8, 4], strides = [1, 1]} : vector<8x32xbf16> to vector<8x4xbf16>
    %cst_19 = arith.constant dense<0.000000e+00> : vector<8x8xf32>
    %32 = tpu.matmul %29, %30, %cst_19 {dimension_numbers = #tpu.dot_dimension_numbers<[1], [1], [0], [0], [0, 0, 1, 0], [], []>} : vector<8x4xbf16>, vector<8x4xbf16>, vector<8x8xf32> -> vector<8x8xf32>
    %cst_20 = arith.constant 5.000000e-01 : f32
    %33 = vector.broadcast %cst_20 : f32 to vector<8x8xf32>
    %34 = arith.mulf %32, %33 : vector<8x8xf32>
    %cst_21 = arith.constant dense<0xFF800000> : vector<8xf32>
    %35 = vector.multi_reduction <maximumf>, %34, %cst_21 [1] : vector<8x8xf32> to vector<8xf32>
    %36 = vector.shape_cast %35 : vector<8xf32> to vector<8x1xf32>
    %37 = vector.broadcast %36 : vector<8x1xf32> to vector<8x8xf32>
    %38 = arith.subf %34, %37 : vector<8x8xf32>
    %39 = math.exp %38 : vector<8x8xf32>
    %cst_22 = arith.constant dense<0.000000e+00> : vector<8xf32>
    %40 = vector.multi_reduction <add>, %39, %cst_22 [1] : vector<8x8xf32> to vector<8xf32>
    %41 = vector.shape_cast %40 : vector<8xf32> to vector<8x1xf32>
    %42 = vector.broadcast %41 : vector<8x1xf32> to vector<8x8xf32>
    %43 = arith.divf %39, %42 : vector<8x8xf32>
    %c0_23 = arith.constant 0 : index
    %c1 = arith.constant 1 : index
    %c0_24 = arith.constant 0 : index
    %c0_25 = arith.constant 0 : index
    %44 = vector.load %arg6[%c0_23, %c1, %c0_24, %c0_25] : memref<1x8x8x8xf32, #tpu.memory_space<vmem>>, vector<1x1x8x8xf32>
    %45 = vector.shape_cast %44 : vector<1x1x8x8xf32> to vector<8x8xf32>
    %46 = vector.shape_cast %43 : vector<8x8xf32> to vector<1x1x8x8xf32>
    tpu.vector_store %arg6[%c0_23, %c1, %c0_24, %c0_25], %46 {strides = array<i32>} : memref<1x8x8x8xf32, #tpu.memory_space<vmem>>, vector<1x1x8x8xf32>,
    %47 = arith.truncf %43 : vector<8x8xf32> to vector<8x8xbf16>
    %cst_26 = arith.constant dense<0.000000e+00> : vector<8x4xf32>
    %48 = tpu.matmul %47, %31, %cst_26 {dimension_numbers = #tpu.dot_dimension_numbers<[1], [0], [0], [1], [0, 0, 1, 1], [], []>} : vector<8x8xbf16>, vector<8x4xbf16>, vector<8x4xf32> -> vector<8x4xf32>
    %49 = vector.extract_strided_slice %2 {offsets = [0, 8], sizes = [8, 4], strides = [1, 1]} : vector<8x32xbf16> to vector<8x4xbf16>
    %50 = vector.extract_strided_slice %5 {offsets = [0, 8], sizes = [8, 4], strides = [1, 1]} : vector<8x32xbf16> to vector<8x4xbf16>
    %51 = vector.extract_strided_slice %8 {offsets = [0, 8], sizes = [8, 4], strides = [1, 1]} : vector<8x32xbf16> to vector<8x4xbf16>
    %cst_27 = arith.constant dense<0.000000e+00> : vector<8x8xf32>
    %52 = tpu.matmul %49, %50, %cst_27 {dimension_numbers = #tpu.dot_dimension_numbers<[1], [1], [0], [0], [0, 0, 1, 0], [], []>} : vector<8x4xbf16>, vector<8x4xbf16>, vector<8x8xf32> -> vector<8x8xf32>
    %cst_28 = arith.constant 5.000000e-01 : f32
    %53 = vector.broadcast %cst_28 : f32 to vector<8x8xf32>
    %54 = arith.mulf %52, %53 : vector<8x8xf32>
    %cst_29 = arith.constant dense<0xFF800000> : vector<8xf32>
    %55 = vector.multi_reduction <maximumf>, %54, %cst_29 [1] : vector<8x8xf32> to vector<8xf32>
    %56 = vector.shape_cast %55 : vector<8xf32> to vector<8x1xf32>
    %57 = vector.broadcast %56 : vector<8x1xf32> to vector<8x8xf32>
    %58 = arith.subf %54, %57 : vector<8x8xf32>
    %59 = math.exp %58 : vector<8x8xf32>
    %cst_30 = arith.constant dense<0.000000e+00> : vector<8xf32>
    %60 = vector.multi_reduction <add>, %59, %cst_30 [1] : vector<8x8xf32> to vector<8xf32>
    %61 = vector.shape_cast %60 : vector<8xf32> to vector<8x1xf32>
    %62 = vector.broadcast %61 : vector<8x1xf32> to vector<8x8xf32>
    %63 = arith.divf %59, %62 : vector<8x8xf32>
    %c0_31 = arith.constant 0 : index
    %c2 = arith.constant 2 : index
    %c0_32 = arith.constant 0 : index
    %c0_33 = arith.constant 0 : index
    %64 = vector.load %arg6[%c0_31, %c2, %c0_32, %c0_33] : memref<1x8x8x8xf32, #tpu.memory_space<vmem>>, vector<1x1x8x8xf32>
    %65 = vector.shape_cast %64 : vector<1x1x8x8xf32> to vector<8x8xf32>
    %66 = vector.shape_cast %63 : vector<8x8xf32> to vector<1x1x8x8xf32>
    tpu.vector_store %arg6[%c0_31, %c2, %c0_32, %c0_33], %66 {strides = array<i32>} : memref<1x8x8x8xf32, #tpu.memory_space<vmem>>, vector<1x1x8x8xf32>,
    %67 = arith.truncf %63 : vector<8x8xf32> to vector<8x8xbf16>
    %cst_34 = arith.constant dense<0.000000e+00> : vector<8x4xf32>
    %68 = tpu.matmul %67, %51, %cst_34 {dimension_numbers = #tpu.dot_dimension_numbers<[1], [0], [0], [1], [0, 0, 1, 1], [], []>} : vector<8x8xbf16>, vector<8x4xbf16>, vector<8x4xf32> -> vector<8x4xf32>
    %69 = vector.extract_strided_slice %2 {offsets = [0, 12], sizes = [8, 4], strides = [1, 1]} : vector<8x32xbf16> to vector<8x4xbf16>
    %70 = vector.extract_strided_slice %5 {offsets = [0, 12], sizes = [8, 4], strides = [1, 1]} : vector<8x32xbf16> to vector<8x4xbf16>
    %71 = vector.extract_strided_slice %8 {offsets = [0, 12], sizes = [8, 4], strides = [1, 1]} : vector<8x32xbf16> to vector<8x4xbf16>
    %cst_35 = arith.constant dense<0.000000e+00> : vector<8x8xf32>
    %72 = tpu.matmul %69, %70, %cst_35 {dimension_numbers = #tpu.dot_dimension_numbers<[1], [1], [0], [0], [0, 0, 1, 0], [], []>} : vector<8x4xbf16>, vector<8x4xbf16>, vector<8x8xf32> -> vector<8x8xf32>
    %cst_36 = arith.constant 5.000000e-01 : f32
    %73 = vector.broadcast %cst_36 : f32 to vector<8x8xf32>
    %74 = arith.mulf %72, %73 : vector<8x8xf32>
    %cst_37 = arith.constant dense<0xFF800000> : vector<8xf32>
    %75 = vector.multi_reduction <maximumf>, %74, %cst_37 [1] : vector<8x8xf32> to vector<8xf32>
    %76 = vector.shape_cast %75 : vector<8xf32> to vector<8x1xf32>
    %77 = vector.broadcast %76 : vector<8x1xf32> to vector<8x8xf32>
    %78 = arith.subf %74, %77 : vector<8x8xf32>
    %79 = math.exp %78 : vector<8x8xf32>
    %cst_38 = arith.constant dense<0.000000e+00> : vector<8xf32>
    %80 = vector.multi_reduction <add>, %79, %cst_38 [1] : vector<8x8xf32> to vector<8xf32>
    %81 = vector.shape_cast %80 : vector<8xf32> to vector<8x1xf32>
    %82 = vector.broadcast %81 : vector<8x1xf32> to vector<8x8xf32>
    %83 = arith.divf %79, %82 : vector<8x8xf32>
    %c0_39 = arith.constant 0 : index
    %c3 = arith.constant 3 : index
    %c0_40 = arith.constant 0 : index
    %c0_41 = arith.constant 0 : index
    %84 = vector.load %arg6[%c0_39, %c3, %c0_40, %c0_41] : memref<1x8x8x8xf32, #tpu.memory_space<vmem>>, vector<1x1x8x8xf32>
    %85 = vector.shape_cast %84 : vector<1x1x8x8xf32> to vector<8x8xf32>
    %86 = vector.shape_cast %83 : vector<8x8xf32> to vector<1x1x8x8xf32>
    tpu.vector_store %arg6[%c0_39, %c3, %c0_40, %c0_41], %86 {strides = array<i32>} : memref<1x8x8x8xf32, #tpu.memory_space<vmem>>, vector<1x1x8x8xf32>,
    %87 = arith.truncf %83 : vector<8x8xf32> to vector<8x8xbf16>
    %cst_42 = arith.constant dense<0.000000e+00> : vector<8x4xf32>
    %88 = tpu.matmul %87, %71, %cst_42 {dimension_numbers = #tpu.dot_dimension_numbers<[1], [0], [0], [1], [0, 0, 1, 1], [], []>} : vector<8x8xbf16>, vector<8x4xbf16>, vector<8x4xf32> -> vector<8x4xf32>
    %89 = vector.extract_strided_slice %2 {offsets = [0, 16], sizes = [8, 4], strides = [1, 1]} : vector<8x32xbf16> to vector<8x4xbf16>
    %90 = vector.extract_strided_slice %5 {offsets = [0, 16], sizes = [8, 4], strides = [1, 1]} : vector<8x32xbf16> to vector<8x4xbf16>
    %91 = vector.extract_strided_slice %8 {offsets = [0, 16], sizes = [8, 4], strides = [1, 1]} : vector<8x32xbf16> to vector<8x4xbf16>
    %cst_43 = arith.constant dense<0.000000e+00> : vector<8x8xf32>
    %92 = tpu.matmul %89, %90, %cst_43 {dimension_numbers = #tpu.dot_dimension_numbers<[1], [1], [0], [0], [0, 0, 1, 0], [], []>} : vector<8x4xbf16>, vector<8x4xbf16>, vector<8x8xf32> -> vector<8x8xf32>
    %cst_44 = arith.constant 5.000000e-01 : f32
    %93 = vector.broadcast %cst_44 : f32 to vector<8x8xf32>
    %94 = arith.mulf %92, %93 : vector<8x8xf32>
    %cst_45 = arith.constant dense<0xFF800000> : vector<8xf32>
    %95 = vector.multi_reduction <maximumf>, %94, %cst_45 [1] : vector<8x8xf32> to vector<8xf32>
    %96 = vector.shape_cast %95 : vector<8xf32> to vector<8x1xf32>
    %97 = vector.broadcast %96 : vector<8x1xf32> to vector<8x8xf32>
    %98 = arith.subf %94, %97 : vector<8x8xf32>
    %99 = math.exp %98 : vector<8x8xf32>
    %cst_46 = arith.constant dense<0.000000e+00> : vector<8xf32>
    %100 = vector.multi_reduction <add>, %99, %cst_46 [1] : vector<8x8xf32> to vector<8xf32>
    %101 = vector.shape_cast %100 : vector<8xf32> to vector<8x1xf32>
    %102 = vector.broadcast %101 : vector<8x1xf32> to vector<8x8xf32>
    %103 = arith.divf %99, %102 : vector<8x8xf32>
    %c0_47 = arith.constant 0 : index
    %c4 = arith.constant 4 : index
    %c0_48 = arith.constant 0 : index
    %c0_49 = arith.constant 0 : index
    %104 = vector.load %arg6[%c0_47, %c4, %c0_48, %c0_49] : memref<1x8x8x8xf32, #tpu.memory_space<vmem>>, vector<1x1x8x8xf32>
    %105 = vector.shape_cast %104 : vector<1x1x8x8xf32> to vector<8x8xf32>
    %106 = vector.shape_cast %103 : vector<8x8xf32> to vector<1x1x8x8xf32>
    tpu.vector_store %arg6[%c0_47, %c4, %c0_48, %c0_49], %106 {strides = array<i32>} : memref<1x8x8x8xf32, #tpu.memory_space<vmem>>, vector<1x1x8x8xf32>,
    %107 = arith.truncf %103 : vector<8x8xf32> to vector<8x8xbf16>
    %cst_50 = arith.constant dense<0.000000e+00> : vector<8x4xf32>
    %108 = tpu.matmul %107, %91, %cst_50 {dimension_numbers = #tpu.dot_dimension_numbers<[1], [0], [0], [1], [0, 0, 1, 1], [], []>} : vector<8x8xbf16>, vector<8x4xbf16>, vector<8x4xf32> -> vector<8x4xf32>
    %109 = vector.extract_strided_slice %2 {offsets = [0, 20], sizes = [8, 4], strides = [1, 1]} : vector<8x32xbf16> to vector<8x4xbf16>
    %110 = vector.extract_strided_slice %5 {offsets = [0, 20], sizes = [8, 4], strides = [1, 1]} : vector<8x32xbf16> to vector<8x4xbf16>
    %111 = vector.extract_strided_slice %8 {offsets = [0, 20], sizes = [8, 4], strides = [1, 1]} : vector<8x32xbf16> to vector<8x4xbf16>
    %cst_51 = arith.constant dense<0.000000e+00> : vector<8x8xf32>
    %112 = tpu.matmul %109, %110, %cst_51 {dimension_numbers = #tpu.dot_dimension_numbers<[1], [1], [0], [0], [0, 0, 1, 0], [], []>} : vector<8x4xbf16>, vector<8x4xbf16>, vector<8x8xf32> -> vector<8x8xf32>
    %cst_52 = arith.constant 5.000000e-01 : f32
    %113 = vector.broadcast %cst_52 : f32 to vector<8x8xf32>
    %114 = arith.mulf %112, %113 : vector<8x8xf32>
    %cst_53 = arith.constant dense<0xFF800000> : vector<8xf32>
    %115 = vector.multi_reduction <maximumf>, %114, %cst_53 [1] : vector<8x8xf32> to vector<8xf32>
    %116 = vector.shape_cast %115 : vector<8xf32> to vector<8x1xf32>
    %117 = vector.broadcast %116 : vector<8x1xf32> to vector<8x8xf32>
    %118 = arith.subf %114, %117 : vector<8x8xf32>
    %119 = math.exp %118 : vector<8x8xf32>
    %cst_54 = arith.constant dense<0.000000e+00> : vector<8xf32>
    %120 = vector.multi_reduction <add>, %119, %cst_54 [1] : vector<8x8xf32> to vector<8xf32>
    %121 = vector.shape_cast %120 : vector<8xf32> to vector<8x1xf32>
    %122 = vector.broadcast %121 : vector<8x1xf32> to vector<8x8xf32>
    %123 = arith.divf %119, %122 : vector<8x8xf32>
    %c0_55 = arith.constant 0 : index
    %c5 = arith.constant 5 : index
    %c0_56 = arith.constant 0 : index
    %c0_57 = arith.constant 0 : index
    %124 = vector.load %arg6[%c0_55, %c5, %c0_56, %c0_57] : memref<1x8x8x8xf32, #tpu.memory_space<vmem>>, vector<1x1x8x8xf32>
    %125 = vector.shape_cast %124 : vector<1x1x8x8xf32> to vector<8x8xf32>
    %126 = vector.shape_cast %123 : vector<8x8xf32> to vector<1x1x8x8xf32>
    tpu.vector_store %arg6[%c0_55, %c5, %c0_56, %c0_57], %126 {strides = array<i32>} : memref<1x8x8x8xf32, #tpu.memory_space<vmem>>, vector<1x1x8x8xf32>,
    %127 = arith.truncf %123 : vector<8x8xf32> to vector<8x8xbf16>
    %cst_58 = arith.constant dense<0.000000e+00> : vector<8x4xf32>
    %128 = tpu.matmul %127, %111, %cst_58 {dimension_numbers = #tpu.dot_dimension_numbers<[1], [0], [0], [1], [0, 0, 1, 1], [], []>} : vector<8x8xbf16>, vector<8x4xbf16>, vector<8x4xf32> -> vector<8x4xf32>
    %129 = vector.extract_strided_slice %2 {offsets = [0, 24], sizes = [8, 4], strides = [1, 1]} : vector<8x32xbf16> to vector<8x4xbf16>
    %130 = vector.extract_strided_slice %5 {offsets = [0, 24], sizes = [8, 4], strides = [1, 1]} : vector<8x32xbf16> to vector<8x4xbf16>
    %131 = vector.extract_strided_slice %8 {offsets = [0, 24], sizes = [8, 4], strides = [1, 1]} : vector<8x32xbf16> to vector<8x4xbf16>
    %cst_59 = arith.constant dense<0.000000e+00> : vector<8x8xf32>
    %132 = tpu.matmul %129, %130, %cst_59 {dimension_numbers = #tpu.dot_dimension_numbers<[1], [1], [0], [0], [0, 0, 1, 0], [], []>} : vector<8x4xbf16>, vector<8x4xbf16>, vector<8x8xf32> -> vector<8x8xf32>
    %cst_60 = arith.constant 5.000000e-01 : f32
    %133 = vector.broadcast %cst_60 : f32 to vector<8x8xf32>
    %134 = arith.mulf %132, %133 : vector<8x8xf32>
    %cst_61 = arith.constant dense<0xFF800000> : vector<8xf32>
    %135 = vector.multi_reduction <maximumf>, %134, %cst_61 [1] : vector<8x8xf32> to vector<8xf32>
    %136 = vector.shape_cast %135 : vector<8xf32> to vector<8x1xf32>
    %137 = vector.broadcast %136 : vector<8x1xf32> to vector<8x8xf32>
    %138 = arith.subf %134, %137 : vector<8x8xf32>
    %139 = math.exp %138 : vector<8x8xf32>
    %cst_62 = arith.constant dense<0.000000e+00> : vector<8xf32>
    %140 = vector.multi_reduction <add>, %139, %cst_62 [1] : vector<8x8xf32> to vector<8xf32>
    %141 = vector.shape_cast %140 : vector<8xf32> to vector<8x1xf32>
    %142 = vector.broadcast %141 : vector<8x1xf32> to vector<8x8xf32>
    %143 = arith.divf %139, %142 : vector<8x8xf32>
    %c0_63 = arith.constant 0 : index
    %c6 = arith.constant 6 : index
    %c0_64 = arith.constant 0 : index
    %c0_65 = arith.constant 0 : index
    %144 = vector.load %arg6[%c0_63, %c6, %c0_64, %c0_65] : memref<1x8x8x8xf32, #tpu.memory_space<vmem>>, vector<1x1x8x8xf32>
    %145 = vector.shape_cast %144 : vector<1x1x8x8xf32> to vector<8x8xf32>
    %146 = vector.shape_cast %143 : vector<8x8xf32> to vector<1x1x8x8xf32>
    tpu.vector_store %arg6[%c0_63, %c6, %c0_64, %c0_65], %146 {strides = array<i32>} : memref<1x8x8x8xf32, #tpu.memory_space<vmem>>, vector<1x1x8x8xf32>,
    %147 = arith.truncf %143 : vector<8x8xf32> to vector<8x8xbf16>
    %cst_66 = arith.constant dense<0.000000e+00> : vector<8x4xf32>
    %148 = tpu.matmul %147, %131, %cst_66 {dimension_numbers = #tpu.dot_dimension_numbers<[1], [0], [0], [1], [0, 0, 1, 1], [], []>} : vector<8x8xbf16>, vector<8x4xbf16>, vector<8x4xf32> -> vector<8x4xf32>
    %149 = vector.extract_strided_slice %2 {offsets = [0, 28], sizes = [8, 4], strides = [1, 1]} : vector<8x32xbf16> to vector<8x4xbf16>
    %150 = vector.extract_strided_slice %5 {offsets = [0, 28], sizes = [8, 4], strides = [1, 1]} : vector<8x32xbf16> to vector<8x4xbf16>
    %151 = vector.extract_strided_slice %8 {offsets = [0, 28], sizes = [8, 4], strides = [1, 1]} : vector<8x32xbf16> to vector<8x4xbf16>
    %cst_67 = arith.constant dense<0.000000e+00> : vector<8x8xf32>
    %152 = tpu.matmul %149, %150, %cst_67 {dimension_numbers = #tpu.dot_dimension_numbers<[1], [1], [0], [0], [0, 0, 1, 0], [], []>} : vector<8x4xbf16>, vector<8x4xbf16>, vector<8x8xf32> -> vector<8x8xf32>
    %cst_68 = arith.constant 5.000000e-01 : f32
    %153 = vector.broadcast %cst_68 : f32 to vector<8x8xf32>
    %154 = arith.mulf %152, %153 : vector<8x8xf32>
    %cst_69 = arith.constant dense<0xFF800000> : vector<8xf32>
    %155 = vector.multi_reduction <maximumf>, %154, %cst_69 [1] : vector<8x8xf32> to vector<8xf32>
    %156 = vector.shape_cast %155 : vector<8xf32> to vector<8x1xf32>
    %157 = vector.broadcast %156 : vector<8x1xf32> to vector<8x8xf32>
    %158 = arith.subf %154, %157 : vector<8x8xf32>
    %159 = math.exp %158 : vector<8x8xf32>
    %cst_70 = arith.constant dense<0.000000e+00> : vector<8xf32>
    %160 = vector.multi_reduction <add>, %159, %cst_70 [1] : vector<8x8xf32> to vector<8xf32>
    %161 = vector.shape_cast %160 : vector<8xf32> to vector<8x1xf32>
    %162 = vector.broadcast %161 : vector<8x1xf32> to vector<8x8xf32>
    %163 = arith.divf %159, %162 : vector<8x8xf32>
    %c0_71 = arith.constant 0 : index
    %c7 = arith.constant 7 : index
    %c0_72 = arith.constant 0 : index
    %c0_73 = arith.constant 0 : index
    %164 = vector.load %arg6[%c0_71, %c7, %c0_72, %c0_73] : memref<1x8x8x8xf32, #tpu.memory_space<vmem>>, vector<1x1x8x8xf32>
    %165 = vector.shape_cast %164 : vector<1x1x8x8xf32> to vector<8x8xf32>
    %166 = vector.shape_cast %163 : vector<8x8xf32> to vector<1x1x8x8xf32>
    tpu.vector_store %arg6[%c0_71, %c7, %c0_72, %c0_73], %166 {strides = array<i32>} : memref<1x8x8x8xf32, #tpu.memory_space<vmem>>, vector<1x1x8x8xf32>,
    %167 = arith.truncf %163 : vector<8x8xf32> to vector<8x8xbf16>
    %cst_74 = arith.constant dense<0.000000e+00> : vector<8x4xf32>
    %168 = tpu.matmul %167, %151, %cst_74 {dimension_numbers = #tpu.dot_dimension_numbers<[1], [0], [0], [1], [0, 0, 1, 1], [], []>} : vector<8x8xbf16>, vector<8x4xbf16>, vector<8x4xf32> -> vector<8x4xf32>
    %169 = tpu.concatenate %28, %48, %68, %88, %108, %128, %148, %168 in 1 : vector<8x4xf32>, vector<8x4xf32>, vector<8x4xf32>, vector<8x4xf32>, vector<8x4xf32>, vector<8x4xf32>, vector<8x4xf32>, vector<8x4xf32> -> vector<8x32xf32>
    %c0_75 = arith.constant 0 : index
    %c0_76 = arith.constant 0 : index
    %c0_77 = arith.constant 0 : index
    %170 = vector.load %arg5[%c0_75, %c0_76, %c0_77] : memref<1x8x32xf32, #tpu.memory_space<vmem>>, vector<1x8x32xf32>
    %171 = vector.shape_cast %170 : vector<1x8x32xf32> to vector<8x32xf32>
    %172 = vector.shape_cast %169 : vector<8x32xf32> to vector<1x8x32xf32>
    tpu.vector_store %arg5[%c0_75, %c0_76, %c0_77], %172 {strides = array<i32>} : memref<1x8x32xf32, #tpu.memory_space<vmem>>, vector<1x8x32xf32>,
    return
  }
  func.func @transform_0(%arg0: i32, %arg1: i32) -> (i32, i32, i32, i32) {
    %c0_i32 = arith.constant 0 : i32
    %c0_i32_0 = arith.constant 0 : i32
    %c0_i32_1 = arith.constant 0 : i32
    return %c0_i32, %arg0, %arg1, %c0_i32_0 : i32, i32, i32, i32
  }
  func.func @transform_1(%arg0: i32, %arg1: i32) -> (i32, i32, i32, i32) {
    %c1_i32 = arith.constant 1 : i32
    %c0_i32 = arith.constant 0 : i32
    %c0_i32_0 = arith.constant 0 : i32
    %c0_i32_1 = arith.constant 0 : i32
    return %c1_i32, %arg0, %c0_i32, %c0_i32_0 : i32, i32, i32, i32
  }
  func.func @transform_2(%arg0: i32, %arg1: i32) -> (i32, i32, i32, i32) {
    %c2_i32 = arith.constant 2 : i32
    %c0_i32 = arith.constant 0 : i32
    %c0_i32_0 = arith.constant 0 : i32
    %c0_i32_1 = arith.constant 0 : i32
    return %c2_i32, %arg0, %c0_i32, %c0_i32_0 : i32, i32, i32, i32
  }
  func.func @transform_3(%arg0: i32, %arg1: i32) -> (i32, i32, i32) {
    %c0_i32 = arith.constant 0 : i32
    %c0_i32_0 = arith.constant 0 : i32
    return %arg0, %arg1, %c0_i32 : i32, i32, i32
  }
  func.func @transform_4(%arg0: i32, %arg1: i32) -> (i32, i32, i32, i32) {
    %c0_i32 = arith.constant 0 : i32
    %c0_i32_0 = arith.constant 0 : i32
    %c0_i32_1 = arith.constant 0 : i32
    return %arg0, %c0_i32, %arg1, %c0_i32_0 : i32, i32, i32, i32
  }
}

</mosaic_0001>

<bundles_post_ra>
// kernel: multi_head_attention.3
= control target key start
LH: loop header
LB: loop body
LE: loop exit
PB: predicated region body
PF: predicated region fallthrough
CT: control target
= control target key end

     0   :  { %10 = vsyncpa [#allocation4], 0  ;;  %s599_s0 = inlined_call_operand.vmem [shape: f32[16,32], index: 0, kind: input, shape index: {}]   ;;  %s600_s1 = inlined_call_operand.hbm [shape: f32[16,32], index: 1, kind: input, shape index: {}]   ;;  %s601_s2 = inlined_call_operand.hbm [shape: f32[16,32], index: 2, kind: input, shape index: {}]   ;;  %s602_s3 = inlined_call_operand.hbm [shape: bf16[3,32,32], index: 3, kind: input, shape index: {}]   ;;  %s603_s4 = inlined_call_operand.hbm [shape: f32[3,1,32], index: 4, kind: input, shape index: {}]   ;;  %s604_s5 = inlined_call_operand.vmem [shape: f32[3,16,32], index: 5, kind: output, shape index: {}]  }
   0x1   :  { %11 = vsyncpa [#allocation6], 0 }
   0x2   :  { %12 = vsyncpa [#allocation9], 0  ;;  %s497_s18 = smov [#allocation5]   ;;  %s498_s20 = smov [#allocation3]  }
   0x3   :  { %s32_s19 = sshll.u32 %s497_s18, 4  ;;  %s20_s21 = sshll.u32 %s498_s20, 4  ;;  %s33_s19 = int_to_ptr.vmem [resolvable:$true] %s32_s19  ;;  %s21_s21 = int_to_ptr.vmem [resolvable:$true] %s20_s21 }
   0x4   :  { %s419_s22 = scalar_lea.vmem %s33_s19, 256  ;;  %p424_p1 = scmp.lt.s32.totalorder %s33_s19, %s33_s19 }
   0x5   :  { %p420_p0 = scmp.ne.s32.totalorder %s33_s19, %s419_s22  ;;  %p425_p2 = scmp.lt.s32.totalorder %s419_s22, %s419_s22 }
   0x7   :  { %p426_p3 = por %p425_p2, %p424_p1 }
   0x9   :  { %p427_p4 = pnand %p426_p3, %p420_p0 }
   0xb   :  { %430 = shalt.err (!%p427_p4)
}
   0xc   :  { %s499_s23 = smov 128   ;;  %s500_s24 = smov 8  }
   0xd   :  { %38 = dma.hbm_to_vmem [thread:$0]  %s601_s2, 256, %s33_s19, [#allocation6], %s499_s23, %s499_s23, %s500_s24  }
   0xe   :  { %s439_s27 = scalar_lea.vmem %s21_s21, 256  ;;  %p444_p6 = scmp.lt.s32.totalorder %s21_s21, %s21_s21 }
   0xf   :  { %p440_p5 = scmp.ne.s32.totalorder %s21_s21, %s439_s27  ;;  %p445_p7 = scmp.lt.s32.totalorder %s439_s27, %s439_s27 }
  0x11   :  { %p446_p8 = por %p445_p7, %p444_p6 }
  0x13   :  { %p447_p9 = pnand %p446_p8, %p440_p5 }
  0x15   :  { %450 = shalt.err (!%p447_p9)
}
  0x16   :  { %26 = dma.hbm_to_vmem [thread:$0]  %s600_s1, 256, %s21_s21, [#allocation4], %s499_s23, %s499_s23, %s500_s24  }
  0x17   :  { %s501_s30 = smov [#allocation7]  }
  0x18   :  { %s44_s6 = sshll.u32 %s501_s30, 4  ;;  %s45_s6 = int_to_ptr.vmem [resolvable:$true] %s44_s6 }
  0x19   :  { %s459_s7 = scalar_lea.vmem %s45_s6, 768  ;;  %p464_p11 = scmp.lt.s32.totalorder %s45_s6, %s45_s6 }
  0x1a   :  { %p460_p10 = scmp.ne.s32.totalorder %s45_s6, %s459_s7  ;;  %p465_p12 = scmp.lt.s32.totalorder %s459_s7, %s459_s7 }
  0x1c   :  { %p466_p13 = por %p465_p12, %p464_p11 }
  0x1e   :  { %p467_p0 = pnand %p466_p13, %p460_p10 }
  0x20   :  { %470 = shalt.err (!%p467_p0)
}
  0x21   :  { %s502_s2 = smov 64   ;;  %s503_s8 = smov 4  }
  0x22   :  { %50 = dma.hbm_to_vmem [thread:$0]  %s602_s3, 768, %s45_s6, [#allocation6], %s502_s2, %s502_s2, %s503_s8  }
  0x23   :  { %s504_s11 = smov [#allocation8]  }
  0x24   :  { %s56_s12 = sshll.u32 %s504_s11, 4  ;;  %s57_s12 = int_to_ptr.vmem [resolvable:$true] %s56_s12 }
  0x25   :  { %s479_s1 = scalar_lea.vmem %s57_s12, 48  ;;  %s483_s13 = scalar_lea.vmem %s57_s12, 64 }
  0x26   :  { %p480_p1 = scmp.ne.s32.totalorder %s57_s12, %s479_s1  ;;  %p484_p2 = scmp.lt.s32.totalorder %s57_s12, %s57_s12 }
  0x27   :  { %p485_p3 = scmp.lt.s32.totalorder %s483_s13, %s479_s1 }
  0x29   :  { %p486_p4 = por %p485_p3, %p484_p2 }
  0x2b   :  { %p487_p5 = pnand %p486_p4, %p480_p1 }
  0x2d   :  { %490 = shalt.err (!%p487_p5)
}
  0x2e   :  { %s505_s14 = smov 16   ;;  %s506_s15 = smov 1  }
  0x2f   :  { %62 = dma.hbm_to_vmem [thread:$0]  %s603_s4, 48, %s57_s12, [#allocation9], %s505_s14, %s505_s14, %s506_s15  }
  0x30   :  { %491 = dma.done.wait [#allocation4], 256  }
  0x31   :  { %492 = vsyncadd [#allocation4], 4294967040 }
  0x32   :  { %493 = dma.done.wait [#allocation6], 1024  }
  0x33   :  { %494 = vsyncadd [#allocation6], 4294966272 }
  0x34   :  { %495 = dma.done.wait [#allocation9], 48  }
  0x35   :  { %496 = vsyncadd [#allocation9], 4294967248  ;;  %vm80_vm0 = vcmask 261120   ;;  %v507_v0 = vmov 0.0   ;;  %vm508_vm1 = vmmov 0   ;;  %v405_v1 = vld [vmem:[#allocation7 + $0x8] sm:$0xff]  }
  0x36   :  { %369 = vmatprep.subr.bf16.mxu0 %v507_v0  ;;  %377 = vmatprep.subr.bf16.mxu1 %v507_v0  ;;  %81 = vst.msk [vmem:[#allocation2] sm:$0xff] %vm80_vm0, %v507_v0  ;;  %82 = vst.msk [vmem:[#allocation2 + $0x8] sm:$0xff] %vm80_vm0, %v507_v0  ;;  %v406_v2 = vld [vmem:[#allocation7 + $0x18] sm:$0xff]   ;;  %v407_v3 = vld [vmem:[#allocation7] sm:$0xff]  }
  0x37   :  { %83 = vst.msk [vmem:[#allocation2 + $0x10] sm:$0xff] %vm80_vm0, %v507_v0  ;;  %84 = vst.msk [vmem:[#allocation2 + $0x18] sm:$0xff] %vm80_vm0, %v507_v0  ;;  %373 = vmatprep.mubr.msk.bf16.mxu0 %vm508_vm1, %v507_v0  ;;  %381 = vmatprep.mubr.msk.bf16.mxu1 %vm508_vm1, %v507_v0  ;;  %v87_v4 = vld [vmem:[%s599_s0] sm:$0xff]  ;;  %v88_v5 = vld [vmem:[%s599_s0 + $0x8] sm:$0xff] }
  0x38   :  { %85 = vst.msk [vmem:[#allocation2 + $0x20] sm:$0xff] %vm80_vm0, %v507_v0  ;;  %86 = vst.msk [vmem:[#allocation2 + $0x28] sm:$0xff] %vm80_vm0, %v507_v0  ;;  %370 = vmatpush3.bf16.msra.mxu0 %v405_v1  ;;  %378 = vmatpush3.bf16.msra.mxu1 %v406_v2  ;;  %v408_v6 = vld [vmem:[#allocation7 + $0x10] sm:$0xff]   ;;  %v89_v7 = vpack.c.bf16 %v88_v5, %v87_v4  ;;  %v409_v8 = vld [vmem:[#allocation7 + $0x28] sm:$0xff]  }
  0x39   :  { %371 = vmatprep.subr.bf16.mxu0 %v507_v0  ;;  %379 = vmatprep.subr.bf16.mxu1 %v507_v0  ;;  %v90_v9 = vld [vmem:[#allocation3] sm:$0xff]  ;;  %v91_v10 = vld [vmem:[#allocation3 + $0x8] sm:$0xff]  ;;  %v93_v13 = vld [vmem:[#allocation5] sm:$0xff] }
  0x3a   :  { %v92_v11 = vpack.c.bf16 %v91_v10, %v90_v9  ;;  %v410_v12 = vld [vmem:[#allocation7 + $0x20] sm:$0xff]   ;;  %v94_v14 = vld [vmem:[#allocation5 + $0x8] sm:$0xff]  ;;  %v357_v33 = vld [vmem:[#allocation8] ss:$0 sm:$0xff] }
  0x3b   :  { %v95_v15 = vpack.c.bf16 %v94_v14, %v93_v13  ;;  %v358_v35 = vld [vmem:[#allocation8 + $0x1] ss:$0 sm:$0xff]  ;;  %v359_v50 = vld [vmem:[#allocation8 + $0x2] ss:$0 sm:$0xff] }
  0x3c   :  { %372 = vmatpush3.bf16.msra.mxu0 %v407_v3  ;;  %380 = vmatpush3.bf16.msra.mxu1 %v408_v6 }
  0x3d   :  { %385 = vmatprep.subr.bf16.mxu0 %v507_v0  ;;  %v96_v16 = vld [vmem:[#allocation2] sm:$0xff]  ;;  %v97_v23 = vld [vmem:[#allocation2 + $0x8] sm:$0xff] }
  0x3e   :  { %v164_v17 = vld [vmem:[#allocation2 + $0x10] sm:$0xff]  ;;  %v165_v25 = vld [vmem:[#allocation2 + $0x18] sm:$0xff] }
  0x3f   :  { %374 = vmatmul.mubr.msk.bf16.vlgmr.msra.gmra.mxu0 %vm80_vm0, %v89_v7  ;;  %382 = vmatmul.mubr.msk.bf16.vlgmr.msra.gmra.mxu1 %vm80_vm0, %v92_v11  ;;  %v232_v31 = vld [vmem:[#allocation2 + $0x20] sm:$0xff]  ;;  %v233_v39 = vld [vmem:[#allocation2 + $0x28] sm:$0xff] }
  0x40   :  { %386 = vmatpush3.bf16.msra.mxu0 %v409_v8  ;;  %389 = vmatprep.mubr.msk.bf16.mxu0 %vm508_vm1, %v507_v0 }
  0x41   :  { %387 = vmatprep.subr.bf16.mxu0 %v507_v0 }
  0x44   :  { %388 = vmatpush3.bf16.msra.mxu0 %v410_v12 }
  0x47   :  { %390 = vmatmul.mubr.msk.bf16.vlgmr.msra.gmra.mxu0 %vm80_vm0, %v95_v15 }
  0xff   :  { %v152_v18 = vpop.f32.mrf.mxu0  ;;  %v220_v20 = vpop.f32.mrf.mxu1 }
 0x100   :  { %v159_v19 = vadd.f32 %v152_v18, %v96_v16  ;;  %v227_v22 = vadd.f32 %v220_v20, %v164_v17 }
 0x101   :  { %v375_v21 = vpop.f32.mrf.mxu0  ;;  %v383_v24 = vpop.f32.mrf.mxu1 }
 0x102   :  { %161 = vst.msk [vmem:[#allocation2] sm:$0xff] %vm80_vm0, %v159_v19  ;;  %229 = vst.msk [vmem:[#allocation2 + $0x10] sm:$0xff] %vm80_vm0, %v227_v22 }
 0x103   :  { %v155_v26 = vpop.f32.mrf.mxu0  ;;  %v223_v28 = vpop.f32.mrf.mxu1 }
 0x104   :  { %v160_v27 = vadd.f32 %v155_v26, %v97_v23  ;;  %v228_v30 = vadd.f32 %v223_v28, %v165_v25 }
 0x105   :  { %v376_v29 = vpop.f32.mrf.mxu0  ;;  %v384_v32 = vpop.f32.mrf.mxu1 }
 0x106   :  { %162 = vst.msk [vmem:[#allocation2 + $0x8] sm:$0xff] %vm80_vm0, %v160_v27  ;;  %230 = vst.msk [vmem:[#allocation2 + $0x18] sm:$0xff] %vm80_vm0, %v228_v30 }
 0x107   :  { %v288_v34 = vpop.f32.mrf.mxu0 }
 0x108   :  { %v295_v36 = vadd.f32 %v288_v34, %v232_v31 }
 0x109   :  { %v302_v37 = vld [vmem:[#allocation2] sm:$0xff]  ;;  %v391_v38 = vpop.f32.mrf.mxu0  ;;  %v304_v41 = vld [vmem:[#allocation2 + $0x10] sm:$0xff] }
 0x10a   :  { %v329_v40 = vadd.f32 %v357_v33, %v302_v37  ;;  %297 = vst.msk [vmem:[#allocation2 + $0x20] sm:$0xff] %vm80_vm0, %v295_v36  ;;  %v331_v42 = vadd.f32 %v358_v35, %v304_v41 }
 0x10b   :  { %v291_v43 = vpop.f32.mrf.mxu0 }
 0x10c   :  { %335 = vst.msk [vmem:[%s604_s5] sm:$0xff] %vm80_vm0, %v329_v40  ;;  %v296_v44 = vadd.f32 %v291_v43, %v233_v39  ;;  %337 = vst.msk [vmem:[%s604_s5 + $0x10] sm:$0xff] %vm80_vm0, %v331_v42 }
 0x10d   :  { %v303_v45 = vld [vmem:[#allocation2 + $0x8] sm:$0xff]  ;;  %v392_v46 = vpop.f32.mrf.mxu0  ;;  %v305_v48 = vld [vmem:[#allocation2 + $0x18] sm:$0xff] }
 0x10e   :  { %v330_v47 = vadd.f32 %v357_v33, %v303_v45  ;;  %298 = vst.msk [vmem:[#allocation2 + $0x28] sm:$0xff] %vm80_vm0, %v296_v44  ;;  %v332_v49 = vadd.f32 %v358_v35, %v305_v48 }
 0x110   :  { %336 = vst.msk [vmem:[%s604_s5 + $0x8] sm:$0xff] %vm80_vm0, %v330_v47  ;;  %338 = vst.msk [vmem:[%s604_s5 + $0x18] sm:$0xff] %vm80_vm0, %v332_v49 }
 0x111   :  { %v306_v51 = vld [vmem:[#allocation2 + $0x20] sm:$0xff] }
 0x112   :  { %v333_v52 = vadd.f32 %v359_v50, %v306_v51 }
 0x114   :  { %339 = vst.msk [vmem:[%s604_s5 + $0x20] sm:$0xff] %vm80_vm0, %v333_v52 }
 0x115   :  { %v307_v53 = vld [vmem:[#allocation2 + $0x28] sm:$0xff] }
 0x116   :  { %v334_v54 = vadd.f32 %v359_v50, %v307_v53 }
 0x118   :  { %340 = vst.msk [vmem:[%s604_s5 + $0x28] sm:$0xff] %vm80_vm0, %v334_v54 }
 0x119   :  { %345 = vsyncpa [#allocation4], 1 }
 0x11a   :  { %346 = vsyncpa [#allocation6], 1 }
 0x11b   :  { %347 = vsyncpa [#allocation9], 1 }

// kernel: multi_head_attention.5
= control target key start
LH: loop header
LB: loop body
LE: loop exit
PB: predicated region body
PF: predicated region fallthrough
CT: control target
= control target key end

     0   :  { %v169_v1 = vmov 0.0   ;;  %vm170_vm0 = vmmov 0   ;;  %vm20_vm1 = vcmask 261120   ;;  %s219_s0 = inlined_call_operand.vmem [shape: f32[16,32], index: 0, kind: input, shape index: {}]   ;;  %s220_s1 = inlined_call_operand.vmem [shape: bf16[32,32], index: 1, kind: input, shape index: {}]   ;;  %s221_s2 = inlined_call_operand.vmem [shape: f32[1,32], index: 2, kind: input, shape index: {}]   ;;  %s222_s3 = inlined_call_operand.hbm [shape: f32[16,32], index: 3, kind: output, shape index: {}]  }
   0x1   :  { %v145_v0 = vld [vmem:[%s220_s1 + $0x8] sm:$0xff]   ;;  %132 = vmatprep.subr.bf16.mxu0 %v169_v1  ;;  %v146_v2 = vld [vmem:[%s220_s1] sm:$0xff]   ;;  %136 = vmatprep.mubr.msk.bf16.mxu0 %vm170_vm0, %v169_v1 }
   0x2   :  { %133 = vmatpush3.bf16.msra.mxu0 %v145_v0  ;;  %v25_v3 = vld [vmem:[%s219_s0] sm:$0xff]  ;;  %v26_v4 = vld [vmem:[%s219_s0 + $0x8] sm:$0xff] }
   0x3   :  { %8 = vsyncpa [#allocation4], 0  ;;  %134 = vmatprep.subr.bf16.mxu0 %v169_v1  ;;  %21 = vst.msk [vmem:[#allocation2] sm:$0xff] %vm20_vm1, %v169_v1  ;;  %v27_v5 = vpack.c.bf16 %v26_v4, %v25_v3  ;;  %v128_v14 = vld [vmem:[%s221_s2] ss:$0 sm:$0xff]  ;;  %s171_s20 = smov [#allocation3]  }
   0x4   :  { %22 = vst.msk [vmem:[#allocation2 + $0x8] sm:$0xff] %vm20_vm1, %v169_v1  ;;  %s114_s21 = sshll.u32 %s171_s20, 4  ;;  %s115_s21 = int_to_ptr.vmem [resolvable:$true] %s114_s21 }
   0x5   :  { %s147_s22 = scalar_lea.vmem %s115_s21, 256  ;;  %p152_p1 = scmp.lt.s32.totalorder %s115_s21, %s115_s21 }
   0x6   :  { %135 = vmatpush3.bf16.msra.mxu0 %v146_v2  ;;  %p148_p0 = scmp.ne.s32.totalorder %s115_s21, %s147_s22  ;;  %p153_p2 = scmp.lt.s32.totalorder %s147_s22, %s147_s22 }
   0x8   :  { %p154_p3 = por %p153_p2, %p152_p1 }
   0x9   :  { %137 = vmatmul.mubr.msk.bf16.vlgmr.msra.gmra.mxu0 %vm20_vm1, %v27_v5 }
   0xa   :  { %v23_v6 = vld [vmem:[#allocation2] sm:$0xff]  ;;  %p155_p4 = pnand %p154_p3, %p148_p0 }
   0xb   :  { %v24_v10 = vld [vmem:[#allocation2 + $0x8] sm:$0xff] }
  0xc9   :  { %v82_v7 = vpop.f32.mrf.mxu0 }
  0xca   :  { %v89_v8 = vadd.f32 %v82_v7, %v23_v6 }
  0xcb   :  { %v138_v9 = vpop.f32.mrf.mxu0 }
  0xcc   :  { %91 = vst.msk [vmem:[#allocation2] sm:$0xff] %vm20_vm1, %v89_v8 }
  0xcd   :  { %v85_v11 = vpop.f32.mrf.mxu0 }
  0xce   :  { %v90_v12 = vadd.f32 %v85_v11, %v24_v10 }
  0xcf   :  { %v139_v13 = vpop.f32.mrf.mxu0 }
  0xd0   :  { %92 = vst.msk [vmem:[#allocation2 + $0x8] sm:$0xff] %vm20_vm1, %v90_v12 }
  0xd3   :  { %v96_v15 = vld [vmem:[#allocation2] sm:$0xff] }
  0xd4   :  { %v105_v16 = vadd.f32 %v128_v14, %v96_v15 }
  0xd6   :  { %107 = vst.msk [vmem:[#allocation3] sm:$0xff] %vm20_vm1, %v105_v16 }
  0xd7   :  { %v97_v17 = vld [vmem:[#allocation2 + $0x8] sm:$0xff] }
  0xd8   :  { %v106_v18 = vadd.f32 %v128_v14, %v97_v17 }
  0xda   :  { %108 = vst.msk [vmem:[#allocation3 + $0x8] sm:$0xff] %vm20_vm1, %v106_v18 }
  0xdb   :  { %158 = shalt.err (!%p155_p4)
}
  0xdc   :  { %s172_s23 = smov 128   ;;  %s173_s2 = smov 8  }
  0xdd   :  { %120 = dma.vmem_to_hbm [thread:$0]  %s115_s21, 256, %s222_s3, [#allocation4], %s172_s23, %s172_s23, %s173_s2  }
  0xde   :  { %167 = dma.done.wait [#allocation4], 256  }
  0xdf   :  { %168 = vsyncadd [#allocation4], 4294967040 }
  0xe0   :  { %124 = vsyncpa [#allocation4], 1 }

// kernel: multi_head_attention.4
= control target key start
LH: loop header
LB: loop body
LE: loop exit
PB: predicated region body
PF: predicated region fallthrough
CT: control target
= control target key end

     0   :  { %10 = vsyncpa [#allocation3], 0  ;;  %s2086_s0 = inlined_call_operand.vmem [shape: f32[3,2,8,32], index: 0, kind: input, shape index: {}, may-alias: {0,1,2}]   ;;  %s2087_s1 = inlined_call_operand.vmem [shape: f32[3,2,8,32], index: 1, kind: input, shape index: {}, may-alias: {0,1,2}]   ;;  %s2088_s2 = inlined_call_operand.vmem [shape: f32[3,2,8,32], index: 2, kind: input, shape index: {}, may-alias: {0,1,2}]   ;;  %s2089_s3 = inlined_call_operand.vmem [shape: f32[2,8,32], index: 3, kind: output, shape index: {0}]   ;;  %s2090_s4 = inlined_call_operand.hbm [shape: f32[2,8,8,8], index: 4, kind: output, shape index: {1}]  }
   0x1   :  { %12 = vsyncpa [#allocation3 + $0x1], 0  ;;  %s1784_s15 = smov 0   ;;  %s1786_s16 = smov 0  }
   0x2   :  { %s1788_s17 = smov 0   ;;  %s1790_s18 = smov 0  }
   0x3   :  { %s1792_s19 = smov 0   ;;  %s1794_s20 = smov 0  }
   0x4 LB: > { %s1390_s21 = sadd.s32 4294967295, %s1739_s20   ;;  %s1391_s22 = sadd.s32 4294967294, %s1739_s20   ;;  %s1739_s20 = sphi %s1794_s20, %s18_s20   ;;  %s1735_s19 = sphi %s1792_s19, %s2097_s19   ;;  %s1731_s18 = sphi %s1790_s18, %s2096_s18   ;;  %s1727_s17 = sphi %s1788_s17, %s2095_s17   ;;  %s1723_s16 = sphi %s1786_s16, %s2094_s16   ;;  %s1719_s15 = sphi %s1784_s15, %s2093_s15  }
   0x5   : > { %s30_s23 = sadd.s32 1, %s1735_s19  ;;  %s147_s24 = sadd.s32 1, %s1727_s17 }
   0x6   : > { %p32_p0 = scmp.ge.s32.totalorder %s30_s23, 2  ;;  %p157_p1 = scmp.ne.s32.totalorder %s1727_s17, %s1723_s16 }
   0x7   : > { %p158_p2 = scmp.eq.s32.totalorder %s1390_s21, 1  ;;  %p163_p3 = scmp.ne.s32.totalorder %s1723_s16, %s1719_s15 }
   0x8   : > { %s2099_s23 = smov (%p32_p0, %s30_s23), 0  ;;  %p164_p5 = scmp.eq.s32.totalorder %s1391_s22, 1 }
   0x9   : > { %p1824_p4 = por %p158_p2, %p157_p1  ;;  %s142_s26 = ssub.s32 %s1735_s19, %s2099_s23 }
   0xa   : > { %p1394_p6 = scmp.ge.s32.totalorder %s1739_s20, 1  ;;  %p145_p7 = scmp.eq.s32.totalorder %s142_s26, 0 }
   0xb   : > { %p1831_p8 = por %p164_p5, %p163_p3  ;;  %p208_p9 = scmp.lt.s32.totalorder %s1739_s20, 3 }
   0xc   : > { %s1837_s28 = scalar_select %p145_p7, %s1727_s17, %s147_s24  }
   0xd   : > { %p209_p10 = pnand %p1394_p6, %p208_p9 }
   0xe   : > { %p253_p11 = scmp.lt.s32.totalorder (!%p209_p10), %s1731_s18, 1  ;;  %s1743_s11 = smov (!%p209_p10), 124  }
   0xf   : > { %212 = sbr.rel (%p209_p10) target bundleno = 1466 (0x5ba), region = 32  ;;  %s1744_s12 = smov (!%p209_p10), 120  }
  0x10   : > { %s1745_s13 = smov (!%p209_p10), 116   ;;  %s1746_s14 = smov (!%p209_p10), 112  }
  0x11   : > { %s1747_s21 = smov (!%p209_p10), 108   ;;  %s1748_s22 = smov (!%p209_p10), 104  }
  0x12   : > { %s1749_s24 = smov (!%p209_p10), 100   ;;  %s250_s6 = sand.u32 (!%p209_p10), 1, %s1723_s16  }
  0x13   : > { %s1750_s9 = smov (!%p209_p10), 4  }
  0x14   : > { %v1741_v0 = vmov 0.0   ;;  %vm1742_vm0 = vmmov 0   ;;  %s254_s29 = scalar_select %p253_p11, %s1731_s18, 1  ;;  %vm284_vm1 = vcmask 31744   ;;  %vm332_vm2 = vcmask 64512  }
  0x15   : > { %1463 = vmatprep.subr.bf16.mxu0 %v1741_v0  ;;  %1465 = vmatprep.mubr.msk.bf16.mxu0 %vm1742_vm0, %v1741_v0  ;;  %vm349_vm3 = vcmask 1043456  }
  0x16   : > { %1469 = vmatprep.subr.bf16.mxu1 %v1741_v0  ;;  %1471 = vmatprep.mubr.msk.bf16.mxu1 %vm1742_vm0, %v1741_v0  ;;  %s1847_s30 = sshll.u32 %s254_s29, 3  ;;  %s2033_s29 = scalar_lea.sflag [#allocation3], %s250_s6 }
  0x17   : > { %s1316_s7 = scalar_lea.vmem %s2087_s1, %s1847_s30  ;;  %s259_s10 = scalar_lea.vmem %s2086_s0, %s1847_s30 }
  0x18   : > { %v1400_v1 = vld [vmem:[%s1316_s7 + $0x10] sm:$0xff]  ;;  %v278_v4 = vld [vmem:[%s259_s10] sm:$0xff]  ;;  %s1319_s5 = scalar_lea.vmem %s2088_s2, %s1847_s30  ;;  %s1395_s7 = sshll.u32 %s250_s6, 6 }
  0x19   : > { %v281_v2 = vpack.c.bf16 %v1400_v1, %v1400_v1  ;;  %v279_v5 = vpack.c.bf16 %v278_v4, %v278_v4  ;;  %v1401_v17 = vld [vmem:[%s1319_s5 + $0x20] sm:$0xff]  ;;  %s1891_s8 = scalar_lea.vmem [#allocation2], %s1395_s7  ;;  %s1751_s10 = smov 8  }
  0x1a   : > { %v1878_v18 = vpack.c.bf16 %v1401_v17, %v1401_v17 }
  0x1b   : > { %v289_v3 = vsel %vm284_vm1, %v281_v2, 0  ;;  %397 = vrot.lane.b32.xlu1 %v281_v2, %s1743_s11 }
  0x1c   : > { %1464 = vmatpush3.bf16.xpose.msra.mxu0 %v289_v3  ;;  %v351_v19 = vsel %vm349_vm3, %v1878_v18, 0 }
  0x1d   : > { %1481 = vmatprep.subr.bf16.mxu0 %v1741_v0  ;;  %1470 = vmatpush3.bf16.msra.mxu1 %v351_v19 }
  0x1e   : > { %1475 = vmatprep.subr.bf16.mxu1 %v1741_v0 }
  0x1f   : > { %394 = vrot.lane.b32.xlu1 %v279_v5, %s1743_s11 }
  0x23   : > { %1466 = vmatmul.mubr.msk.bf16.vlgmr.msra.gmra.mxu0 %vm284_vm1, %v279_v5  ;;  %509 = vrot.lane.b32.xlu1 %v279_v5, %s1744_s12 }
  0x24   : > { %1483 = vmatprep.mubr.msk.bf16.mxu0 %vm1742_vm0, %v1741_v0 }
  0x27   : > { %624 = vrot.lane.b32.xlu1 %v281_v2, %s1745_s13 }
  0x2b   : > { %622 = vrot.lane.b32.xlu1 %v279_v5, %s1745_s13 }
  0x2f   : > { %737 = vrot.lane.b32.xlu1 %v281_v2, %s1746_s14 }
  0x33   : > { %735 = vrot.lane.b32.xlu1 %v279_v5, %s1746_s14 }
  0x37   : > { %850 = vrot.lane.b32.xlu1 %v281_v2, %s1747_s21 }
  0x3b   : > { %963 = vrot.lane.b32.xlu1 %v281_v2, %s1748_s22 }
  0x3f   : > { %1076 = vrot.lane.b32.xlu1 %v281_v2, %s1749_s24 }
  0x8d   : > { %v398_v21 = vpop.permute.xlu1 %397 }
  0x8e   : > { %v403_v26 = vsel %vm284_vm1, %v398_v21, 0 }
  0x91   : > { %v395_v22 = vpop.permute.xlu1 %394 }
  0x95   : > { %v510_v25 = vpop.permute.xlu1 %509 }
  0x99   : > { %v625_v29 = vpop.permute.xlu1 %624 }
  0x9a   : > { %v630_v32 = vsel %vm284_vm1, %v625_v29, 0 }
  0x9d   : > { %v623_v31 = vpop.permute.xlu1 %622 }
  0xa1   : > { %v738_v33 = vpop.permute.xlu1 %737 }
  0xa2   : > { %v743_v35 = vsel %vm284_vm1, %v738_v33, 0 }
  0xa5   : > { %v736_v34 = vpop.permute.xlu1 %735 }
  0xa9   : > { %v851_v36 = vpop.permute.xlu1 %850 }
  0xaa   : > { %v856_v37 = vsel %vm284_vm1, %v851_v36, 0 }
  0xad   : > { %v964_v38 = vpop.permute.xlu1 %963 }
  0xae   : > { %v969_v40 = vsel %vm284_vm1, %v964_v38, 0 }
  0xb1   : > { %v1077_v41 = vpop.permute.xlu1 %1076 }
  0xb2   : > { %v1082_v43 = vsel %vm284_vm1, %v1077_v41, 0 }
  0xe3   : > { %v325_v6 = vpop.f32.mrf.mxu0 }
  0xe4   : > { %v331_v7 = vmul.f32 0.5, %v325_v6 }
  0xe5   : > { %v1467_v8 = vpop.f32.mrf.mxu0 }
  0xe6   : > { %v333_v9 = vsel %vm332_vm2, %v331_v7, -inf }
  0xe7   : > { %334 = vmax.xlane.f32.xlu0 %v333_v9  ;;  %v328_v10 = vpop.f32.mrf.mxu0 }
  0xe9   : > { %v1468_v11 = vpop.f32.mrf.mxu0 }
 0x170   : > { %v335_v12 = vpop.xlane.xlu0 %334 }
 0x171   : > { %v336_v13 = vsub.f32 %v331_v7, %v335_v12 }
 0x173   : > { %v337_v14 = vmul.f32 1.442695, %v336_v13 }
 0x175   : > { %1631 = vpow2.f32 %v337_v14 }
 0x182   : > { %v1632_v15 = vpop.eup %1631 }
 0x183   : > { %v339_v16 = vsel %vm332_vm2, %v1632_v15, 0.0 }
 0x184   : > { %340 = vadd.xlane.f32.xlu0 %v339_v16 }
 0x19a   : > { %511 = vrot.lane.b32.xlu0 %v281_v2, %s1744_s12 }
 0x19e   : > { %848 = vrot.lane.b32.xlu0 %v279_v5, %s1747_s21 }
 0x1a2   : > { %961 = vrot.lane.b32.xlu0 %v279_v5, %s1748_s22 }
 0x1a6   : > { %1074 = vrot.lane.b32.xlu0 %v279_v5, %s1749_s24 }
 0x20d   : > { %v341_v20 = vpop.xlane.xlu0 %340 }
 0x20e   : > { %1633 = vrcp.f32 %v341_v20 }
 0x211   : > { %v512_v28 = vpop.permute.xlu0 %511 }
 0x212   : > { %v517_v30 = vsel %vm284_vm1, %v512_v28, 0 }
 0x215   : > { %v849_v39 = vpop.permute.xlu0 %848 }
 0x219   : > { %v962_v42 = vpop.permute.xlu0 %961 }
 0x21b   : > { %v1634_v23 = vpop.eup %1633 }
 0x21c   : > { %v343_v24 = vmul.f32 %v1634_v23, %v1632_v15 }
 0x21d   : > { %v1075_v44 = vpop.permute.xlu0 %1074 }
 0x21e   : > { %344 = vst.msk [vmem:[%s1891_s8] sm:$0xff] %vm332_vm2, %v343_v24  ;;  %v345_v27 = vpack.c.bf16 %v343_v24, %v343_v24 }
 0x220   : > { %1472 = vmatmul.mubr.msk.bf16.vlgmr.msra.gmra.mxu1 %vm332_vm2, %v345_v27 }
 0x221   : > { %1476 = vmatpush3.bf16.xpose.msra.mxu1 %v403_v26  ;;  %1477 = vmatprep.mubr.msk.bf16.mxu1 %vm1742_vm0, %v1741_v0 }
 0x222   : > { %1487 = vmatprep.subr.bf16.mxu1 %v1741_v0 }
 0x228   : > { %1478 = vmatmul.mubr.msk.bf16.vlgmr.msra.gmra.mxu1 %vm284_vm1, %v395_v22 }
 0x229   : > { %1488 = vmatpush3.bf16.xpose.msra.mxu1 %v517_v30  ;;  %1489 = vmatprep.mubr.msk.bf16.mxu1 %vm1742_vm0, %v1741_v0 }
 0x22a   : > { %1499 = vmatprep.subr.bf16.mxu1 %v1741_v0 }
 0x230   : > { %1490 = vmatmul.mubr.msk.bf16.vlgmr.msra.gmra.mxu1 %vm284_vm1, %v510_v25 }
 0x231   : > { %1500 = vmatpush3.bf16.xpose.msra.mxu1 %v630_v32  ;;  %1501 = vmatprep.mubr.msk.bf16.mxu1 %vm1742_vm0, %v1741_v0 }
 0x232   : > { %1511 = vmatprep.subr.bf16.mxu1 %v1741_v0 }
 0x238   : > { %1502 = vmatmul.mubr.msk.bf16.vlgmr.msra.gmra.mxu1 %vm284_vm1, %v623_v31 }
 0x239   : > { %1512 = vmatpush3.bf16.xpose.msra.mxu1 %v743_v35  ;;  %1513 = vmatprep.mubr.msk.bf16.mxu1 %vm1742_vm0, %v1741_v0 }
 0x23a   : > { %1523 = vmatprep.subr.bf16.mxu1 %v1741_v0 }
 0x240   : > { %1514 = vmatmul.mubr.msk.bf16.vlgmr.msra.gmra.mxu1 %vm284_vm1, %v736_v34 }
 0x241   : > { %1524 = vmatpush3.bf16.xpose.msra.mxu1 %v856_v37  ;;  %1525 = vmatprep.mubr.msk.bf16.mxu1 %vm1742_vm0, %v1741_v0 }
 0x242   : > { %1535 = vmatprep.subr.bf16.mxu1 %v1741_v0 }
 0x248   : > { %1526 = vmatmul.mubr.msk.bf16.vlgmr.msra.gmra.mxu1 %vm284_vm1, %v849_v39 }
 0x249   : > { %1536 = vmatpush3.bf16.xpose.msra.mxu1 %v969_v40  ;;  %1537 = vmatprep.mubr.msk.bf16.mxu1 %vm1742_vm0, %v1741_v0 }
 0x24a   : > { %1547 = vmatprep.subr.bf16.mxu1 %v1741_v0 }
 0x250   : > { %1538 = vmatmul.mubr.msk.bf16.vlgmr.msra.gmra.mxu1 %vm284_vm1, %v962_v42 }
 0x251   : > { %1548 = vmatpush3.bf16.xpose.msra.mxu1 %v1082_v43  ;;  %1549 = vmatprep.mubr.msk.bf16.mxu1 %vm1742_vm0, %v1741_v0 }
 0x258   : > { %1550 = vmatmul.mubr.msk.bf16.vlgmr.msra.gmra.mxu1 %vm284_vm1, %v1075_v44 }
 0x2e0   : > { %v1929_v45 = vpop.f32.mrf.mxu1 }
 0x2e2   : > { %v1473_v46 = vpop.f32.mrf.mxu1 }
 0x2e4   : > { %v390_v47 = vpop.f32.mrf.mxu1 }
 0x2e6   : > { %v1474_v48 = vpop.f32.mrf.mxu1 }
 0x2e8   : > { %v439_v49 = vpop.f32.mrf.mxu1 }
 0x2e9   : > { %v445_v50 = vmul.f32 0.5, %v439_v49 }
 0x2ea   : > { %v1479_v51 = vpop.f32.mrf.mxu1 }
 0x2eb   : > { %v446_v52 = vsel %vm332_vm2, %v445_v50, -inf }
 0x2ec   : > { %447 = vmax.xlane.f32.xlu1 %v446_v52  ;;  %v442_v53 = vpop.f32.mrf.mxu1 }
 0x2ee   : > { %v1480_v54 = vpop.f32.mrf.mxu1 }
 0x2f0   : > { %v553_v55 = vpop.f32.mrf.mxu1 }
 0x2f1   : > { %v559_v56 = vmul.f32 0.5, %v553_v55 }
 0x2f2   : > { %v1491_v57 = vpop.f32.mrf.mxu1 }
 0x2f3   : > { %v560_v58 = vsel %vm332_vm2, %v559_v56, -inf }
 0x2f4   : > { %561 = vmax.xlane.f32.xlu0 %v560_v58  ;;  %v556_v59 = vpop.f32.mrf.mxu1 }
 0x2f6   : > { %v1492_v60 = vpop.f32.mrf.mxu1 }
 0x2f8   : > { %v666_v61 = vpop.f32.mrf.mxu1 }
 0x2f9   : > { %v672_v62 = vmul.f32 0.5, %v666_v61 }
 0x2fa   : > { %v1503_v63 = vpop.f32.mrf.mxu1 }
 0x2fb   : > { %v673_v1 = vsel %vm332_vm2, %v672_v62, -inf }
 0x2fc   : > { %674 = vmax.xlane.f32.xlu0 %v673_v1  ;;  %v669_v2 = vpop.f32.mrf.mxu1 }
 0x2fe   : > { %v1504_v3 = vpop.f32.mrf.mxu1 }
 0x300   : > { %v779_v4 = vpop.f32.mrf.mxu1 }
 0x301   : > { %v785_v5 = vmul.f32 0.5, %v779_v4 }
 0x302   : > { %v1515_v6 = vpop.f32.mrf.mxu1 }
 0x303   : > { %v786_v7 = vsel %vm332_vm2, %v785_v5, -inf }
 0x304   : > { %787 = vmax.xlane.f32.xlu1 %v786_v7  ;;  %v782_v8 = vpop.f32.mrf.mxu1 }
 0x306   : > { %v1516_v9 = vpop.f32.mrf.mxu1 }
 0x308   : > { %v892_v10 = vpop.f32.mrf.mxu1 }
 0x309   : > { %v898_v11 = vmul.f32 0.5, %v892_v10 }
 0x30a   : > { %v1527_v12 = vpop.f32.mrf.mxu1 }
 0x30b   : > { %v899_v13 = vsel %vm332_vm2, %v898_v11, -inf }
 0x30c   : > { %900 = vmax.xlane.f32.xlu0 %v899_v13  ;;  %v895_v14 = vpop.f32.mrf.mxu1 }
 0x30e   : > { %v1528_v15 = vpop.f32.mrf.mxu1 }
 0x310   : > { %v1005_v16 = vpop.f32.mrf.mxu1 }
 0x311   : > { %v1011_v17 = vmul.f32 0.5, %v1005_v16 }
 0x312   : > { %v1539_v19 = vpop.f32.mrf.mxu1 }
 0x313   : > { %v1012_v20 = vsel %vm332_vm2, %v1011_v17, -inf }
 0x314   : > { %1013 = vmax.xlane.f32.xlu1 %v1012_v20  ;;  %v1008_v21 = vpop.f32.mrf.mxu1 }
 0x316   : > { %v1540_v22 = vpop.f32.mrf.mxu1 }
 0x318   : > { %v1118_v23 = vpop.f32.mrf.mxu1 }
 0x319   : > { %v1124_v24 = vmul.f32 0.5, %v1118_v23 }
 0x31a   : > { %v1551_v25 = vpop.f32.mrf.mxu1 }
 0x31b   : > { %v1125_v26 = vsel %vm332_vm2, %v1124_v24, -inf }
 0x31c   : > { %1126 = vmax.xlane.f32.xlu0 %v1125_v26  ;;  %v1121_v27 = vpop.f32.mrf.mxu1 }
 0x31e   : > { %v1552_v28 = vpop.f32.mrf.mxu1 }
 0x325   : > { %461 = vrot.lane.b32.xlu1 %v1878_v18, %s1743_s11  ;;  %s1752_s11 = smov 12  }
 0x332   : > { %574 = vrot.lane.b32.xlu0 %v1878_v18, %s1744_s12  ;;  %s1753_s12 = smov 16  }
 0x375   : > { %v448_v29 = vpop.xlane.xlu1 %447 }
 0x376   : > { %v449_v30 = vsub.f32 %v445_v50, %v448_v29 }
 0x378   : > { %v450_v31 = vmul.f32 1.442695, %v449_v30 }
 0x37a   : > { %1635 = vpow2.f32 %v450_v31 }
 0x37d   : > { %v562_v32 = vpop.xlane.xlu0 %561 }
 0x37e   : > { %v563_v33 = vsub.f32 %v559_v56, %v562_v32 }
 0x380   : > { %v564_v34 = vmul.f32 1.442695, %v563_v33 }
 0x382   : > { %1637 = vpow2.f32 %v564_v34 }
 0x385   : > { %v675_v35 = vpop.xlane.xlu0 %674 }
 0x386   : > { %v676_v36 = vsub.f32 %v672_v62, %v675_v35 }
 0x387   : > { %v1636_v37 = vpop.eup %1635 }
 0x388   : > { %v677_v38 = vmul.f32 1.442695, %v676_v36  ;;  %v452_v39 = vsel %vm332_vm2, %v1636_v37, 0.0 }
 0x389   : > { %453 = vadd.xlane.f32.xlu1 %v452_v39 }
 0x38a   : > { %1639 = vpow2.f32 %v677_v38 }
 0x38d   : > { %v788_v44 = vpop.xlane.xlu1 %787 }
 0x38e   : > { %v789_v49 = vsub.f32 %v785_v5, %v788_v44 }
 0x38f   : > { %v1638_v40 = vpop.eup %1637 }
 0x390   : > { %v566_v41 = vsel %vm332_vm2, %v1638_v40, 0.0  ;;  %v790_v51 = vmul.f32 1.442695, %v789_v49 }
 0x391   : > { %567 = vadd.xlane.f32.xlu0 %v566_v41 }
 0x392   : > { %1641 = vpow2.f32 %v790_v51 }
 0x395   : > { %v901_v50 = vpop.xlane.xlu0 %900 }
 0x396   : > { %v902_v52 = vsub.f32 %v898_v11, %v901_v50 }
 0x397   : > { %v1944_v42 = vpop.eup %1639 }
 0x398   : > { %v679_v43 = vsel %vm332_vm2, %v1944_v42, 0.0  ;;  %v903_v55 = vmul.f32 1.442695, %v902_v52 }
 0x399   : > { %680 = vadd.xlane.f32.xlu1 %v679_v43 }
 0x39a   : > { %1643 = vpow2.f32 %v903_v55 }
 0x39d   : > { %v1014_v46 = vpop.xlane.xlu1 %1013 }
 0x39e   : > { %v1015_v54 = vsub.f32 %v1011_v17, %v1014_v46 }
 0x39f   : > { %v1642_v59 = vpop.eup %1641 }
 0x3a0   : > { %v1016_v57 = vmul.f32 1.442695, %v1015_v54  ;;  %v792_v60 = vsel %vm332_vm2, %v1642_v59, 0.0 }
 0x3a1   : > { %v462_v47 = vpop.permute.xlu1 %461 }
 0x3a2   : > { %v467_v48 = vsel %vm349_vm3, %v462_v47, 0  ;;  %1645 = vpow2.f32 %v1016_v57 }
 0x3a3   : > { %1482 = vmatpush3.bf16.msra.mxu0 %v467_v48 }
 0x3a4   : > { %1493 = vmatprep.subr.bf16.mxu0 %v1741_v0 }
 0x3a5   : > { %v1127_v53 = vpop.xlane.xlu0 %1126 }
 0x3a6   : > { %v1128_v56 = vsub.f32 %v1124_v24, %v1127_v53 }
 0x3a7   : > { %687 = vrot.lane.b32.xlu0 %v1878_v18, %s1745_s13  ;;  %v1955_v61 = vpop.eup %1643  ;;  %s1754_s13 = smov 20  }
 0x3a8   : > { %v1129_v58 = vmul.f32 1.442695, %v1128_v56  ;;  %v905_v63 = vsel %vm332_vm2, %v1955_v61, 0.0 }
 0x3a9   : > { %v575_v5 = vpop.permute.xlu0 %574 }
 0x3aa   : > { %800 = vrot.lane.b32.xlu1 %v1878_v18, %s1746_s14  ;;  %1647 = vpow2.f32 %v1129_v58  ;;  %v580_v11 = vsel %vm349_vm3, %v575_v5, 0  ;;  %s1430_s14 = sshll.u32 %s1731_s18, 10  ;;  %s1755_s18 = smov [#allocation2]  }
 0x3ab   : > { %s2027_s26 = scalar_lea.hbm %s2090_s4, %s1430_s14  ;;  %s1667_s7 = sshll.u32 %s1755_s18, 4  ;;  %s1668_s7 = int_to_ptr.vmem [resolvable:$false] %s1667_s7 }
 0x3af   : > { %v1957_v62 = vpop.eup %1645 }
 0x3b0   : > { %v1018_v2 = vsel %vm332_vm2, %v1957_v62, 0.0 }
 0x3b7   : > { %v1961_v1 = vpop.eup %1647 }
 0x3b8   : > { %v1131_v3 = vsel %vm332_vm2, %v1961_v1, 0.0 }
 0x3c6   : > { %793 = vadd.xlane.f32.xlu0 %v792_v60 }
 0x3ca   : > { %906 = vadd.xlane.f32.xlu0 %v905_v63 }
 0x3ce   : > { %1019 = vadd.xlane.f32.xlu1 %v1018_v2  ;;  %1132 = vadd.xlane.f32.xlu0 %v1131_v3 }
 0x3df   : > { %1026 = vrot.lane.b32.xlu1 %v1878_v18, %s1748_s22 }
 0x3e3   : > { %1139 = vrot.lane.b32.xlu1 %v1878_v18, %s1749_s24 }
 0x3e4   : > { %913 = vrot.lane.b32.xlu0 %v1878_v18, %s1747_s21  ;;  %s1254_s21 = sshll.u32 %s1891_s8, 4  ;;  %s2029_s21 = int_to_ptr.vmem [resolvable:$true] %s1254_s21 }
 0x3e5   : > { %s1663_s5 = scalar_lea.vmem %s2029_s21, 1024  ;;  %p1670_p1 = scmp.lt.s32.totalorder %s2029_s21, %s1668_s7 }
 0x3e6   : > { %p1664_p12 = scmp.ne.s32.totalorder %s2029_s21, %s1663_s5 }
 0x3e8   : > { %p1665_p13 = pnand %p1664_p12, %p1824_p4 }
 0x3ea   : > { %p1666_p0 = pneg %p1665_p13 }
 0x412   : > { %v454_v4 = vpop.xlane.xlu1 %453 }
 0x413   : > { %1649 = vrcp.f32 %v454_v4 }
 0x41a   : > { %v568_v6 = vpop.xlane.xlu0 %567 }
 0x41b   : > { %1651 = vrcp.f32 %v568_v6 }
 0x41e   : > { %v688_v13 = vpop.permute.xlu0 %687 }
 0x41f   : > { %v693_v15 = vsel %vm349_vm3, %v688_v13, 0 }
 0x420   : > { %v1650_v7 = vpop.eup %1649 }
 0x421   : > { %v456_v8 = vmul.f32 %v1650_v7, %v1636_v37 }
 0x422   : > { %v681_v9 = vpop.xlane.xlu1 %680 }
 0x423   : > { %1653 = vrcp.f32 %v681_v9  ;;  %1405 = vst.msk [vmem:[%s1891_s8 + $0x8] sm:$0xff] %vm332_vm2, %v456_v8  ;;  %v459_v10 = vpack.c.bf16 %v456_v8, %v456_v8 }
 0x425   : > { %1484 = vmatmul.mubr.msk.bf16.vlgmr.msra.gmra.mxu0 %vm332_vm2, %v459_v10 }
 0x426   : > { %1494 = vmatpush3.bf16.msra.mxu0 %v580_v11  ;;  %1495 = vmatprep.mubr.msk.bf16.mxu0 %vm1742_vm0, %v1741_v0  ;;  %v801_v19 = vpop.permute.xlu1 %800 }
 0x427   : > { %1505 = vmatprep.subr.bf16.mxu0 %v1741_v0  ;;  %v806_v21 = vsel %vm349_vm3, %v801_v19, 0 }
 0x428   : > { %v1652_v18 = vpop.eup %1651 }
 0x429   : > { %v570_v12 = vmul.f32 %v1652_v18, %v1638_v40 }
 0x42b   : > { %1408 = vst.msk [vmem:[%s1891_s8 + $0x10] sm:$0xff] %vm332_vm2, %v570_v12  ;;  %v573_v14 = vpack.c.bf16 %v570_v12, %v570_v12 }
 0x42d   : > { %1496 = vmatmul.mubr.msk.bf16.vlgmr.msra.gmra.mxu0 %vm332_vm2, %v573_v14 }
 0x42e   : > { %1506 = vmatpush3.bf16.msra.mxu0 %v693_v15  ;;  %1507 = vmatprep.mubr.msk.bf16.mxu0 %vm1742_vm0, %v1741_v0 }
 0x42f   : > { %1517 = vmatprep.subr.bf16.mxu0 %v1741_v0 }
 0x430   : > { %v1654_v16 = vpop.eup %1653 }
 0x431   : > { %v683_v17 = vmul.f32 %v1654_v16, %v1944_v42 }
 0x433   : > { %1411 = vst.msk [vmem:[%s1891_s8 + $0x18] sm:$0xff] %vm332_vm2, %v683_v17  ;;  %v686_v20 = vpack.c.bf16 %v683_v17, %v683_v17 }
 0x435   : > { %1508 = vmatmul.mubr.msk.bf16.vlgmr.msra.gmra.mxu0 %vm332_vm2, %v686_v20 }
 0x436   : > { %1518 = vmatpush3.bf16.msra.mxu0 %v806_v21  ;;  %1519 = vmatprep.mubr.msk.bf16.mxu0 %vm1742_vm0, %v1741_v0 }
 0x437   : > { %1529 = vmatprep.subr.bf16.mxu0 %v1741_v0 }
 0x44f   : > { %v794_v22 = vpop.xlane.xlu0 %793 }
 0x450   : > { %1655 = vrcp.f32 %v794_v22 }
 0x453   : > { %v907_v23 = vpop.xlane.xlu0 %906 }
 0x454   : > { %1657 = vrcp.f32 %v907_v23 }
 0x457   : > { %v1020_v24 = vpop.xlane.xlu1 %1019  ;;  %v1133_v25 = vpop.xlane.xlu0 %1132 }
 0x458   : > { %1659 = vrcp.f32 %v1020_v24 }
 0x459   : > { %1661 = vrcp.f32 %v1133_v25 }
 0x45b   : > { %v914_v27 = vpop.permute.xlu0 %913  ;;  %v1027_v34 = vpop.permute.xlu1 %1026 }
 0x45c   : > { %v919_v29 = vsel %vm349_vm3, %v914_v27, 0  ;;  %v1032_v38 = vsel %vm349_vm3, %v1027_v34, 0 }
 0x45d   : > { %v1656_v26 = vpop.eup %1655 }
 0x45e   : > { %v796_v28 = vmul.f32 %v1656_v26, %v1642_v59 }
 0x45f   : > { %v1140_v40 = vpop.permute.xlu1 %1139 }
 0x460   : > { %1414 = vst.msk [vmem:[%s1891_s8 + $0x20] sm:$0xff] %vm332_vm2, %v796_v28  ;;  %v799_v30 = vpack.c.bf16 %v796_v28, %v796_v28  ;;  %v1145_v41 = vsel %vm349_vm3, %v1140_v40, 0 }
 0x461   : > { %v1658_v31 = vpop.eup %1657 }
 0x462   : > { %1520 = vmatmul.mubr.msk.bf16.vlgmr.msra.gmra.mxu0 %vm332_vm2, %v799_v30  ;;  %v909_v32 = vmul.f32 %v1658_v31, %v1955_v61 }
 0x463   : > { %1530 = vmatpush3.bf16.msra.mxu0 %v919_v29  ;;  %1531 = vmatprep.mubr.msk.bf16.mxu0 %vm1742_vm0, %v1741_v0 }
 0x464   : > { %1541 = vmatprep.subr.bf16.mxu0 %v1741_v0  ;;  %1417 = vst.msk [vmem:[%s1891_s8 + $0x28] sm:$0xff] %vm332_vm2, %v909_v32  ;;  %v912_v39 = vpack.c.bf16 %v909_v32, %v909_v32 }
 0x465   : > { %v1660_v33 = vpop.eup %1659 }
 0x466   : > { %v1662_v35 = vpop.eup %1661  ;;  %v1022_v36 = vmul.f32 %v1660_v33, %v1957_v62 }
 0x467   : > { %v1135_v37 = vmul.f32 %v1662_v35, %v1961_v1 }
 0x468   : > { %1420 = vst.msk [vmem:[%s1891_s8 + $0x30] sm:$0xff] %vm332_vm2, %v1022_v36  ;;  %v1025_v42 = vpack.c.bf16 %v1022_v36, %v1022_v36 }
 0x469   : > { %1423 = vst.msk [vmem:[%s1891_s8 + $0x38] sm:$0xff] %vm332_vm2, %v1135_v37  ;;  %v1138_v43 = vpack.c.bf16 %v1135_v37, %v1135_v37  ;;  %s1669_s8 = scalar_lea.vmem %s1668_s7, 2048 }
 0x46a   : > { %1532 = vmatmul.mubr.msk.bf16.vlgmr.msra.gmra.mxu0 %vm332_vm2, %v912_v39  ;;  %p1671_p2 = scmp.lt.s32.totalorder %s1669_s8, %s1663_s5 }
 0x46b   : > { %1542 = vmatpush3.bf16.msra.mxu0 %v1032_v38  ;;  %1543 = vmatprep.mubr.msk.bf16.mxu0 %vm1742_vm0, %v1741_v0 }
 0x46c   : > { %1553 = vmatprep.subr.bf16.mxu0 %v1741_v0  ;;  %p1672_p3 = por %p1671_p2, %p1670_p1 }
 0x46e   : > { %p1673_p5 = pnand %p1672_p3, %p1666_p0 }
 0x472   : > { %1544 = vmatmul.mubr.msk.bf16.vlgmr.msra.gmra.mxu0 %vm332_vm2, %v1025_v42 }
 0x473   : > { %1554 = vmatpush3.bf16.msra.mxu0 %v1145_v41  ;;  %1555 = vmatprep.mubr.msk.bf16.mxu0 %vm1742_vm0, %v1741_v0 }
 0x47a   : > { %1556 = vmatmul.mubr.msk.bf16.vlgmr.msra.gmra.mxu0 %vm332_vm2, %v1138_v43 }
 0x4e5   : > { %v503_v44 = vpop.f32.mrf.mxu0 }
 0x4e6   : > { %1188 = vrot.lane.b32.xlu1 %v503_v44, %s1750_s9 }
 0x4e7   : > { %v1485_v46 = vpop.f32.mrf.mxu0 }
 0x4e9   : > { %v506_v47 = vpop.f32.mrf.mxu0 }
 0x4eb   : > { %v1486_v48 = vpop.f32.mrf.mxu0 }
 0x4ed   : > { %v616_v49 = vpop.f32.mrf.mxu0 }
 0x4ee   : > { %1192 = vrot.lane.b32.xlu1 %v616_v49, %s1751_s10 }
 0x4ef   : > { %v1497_v50 = vpop.f32.mrf.mxu0 }
 0x4f1   : > { %v619_v51 = vpop.f32.mrf.mxu0 }
 0x4f3   : > { %v1498_v52 = vpop.f32.mrf.mxu0 }
 0x4f5   : > { %v729_v53 = vpop.f32.mrf.mxu0 }
 0x4f6   : > { %1196 = vrot.lane.b32.xlu0 %v729_v53, %s1752_s11 }
 0x4f7   : > { %v1509_v0 = vpop.f32.mrf.mxu0 }
 0x4f9   : > { %v732_v54 = vpop.f32.mrf.mxu0 }
 0x4fb   : > { %v1510_v55 = vpop.f32.mrf.mxu0 }
 0x522   : > { %v842_v56 = vpop.f32.mrf.mxu0 }
 0x523   : > { %1200 = vrot.lane.b32.xlu1 %v842_v56, %s1753_s12 }
 0x524   : > { %v1521_v57 = vpop.f32.mrf.mxu0 }
 0x526   : > { %v845_v58 = vpop.f32.mrf.mxu0 }
 0x528   : > { %v1522_v59 = vpop.f32.mrf.mxu0 }
 0x52a   : > { %v955_v60 = vpop.f32.mrf.mxu0 }
 0x52b   : > { %1204 = vrot.lane.b32.xlu0 %v955_v60, %s1754_s13 }
 0x52c   : > { %v1533_v61 = vpop.f32.mrf.mxu0 }
 0x52e   : > { %v958_v62 = vpop.f32.mrf.mxu0 }
 0x530   : > { %v1534_v63 = vpop.f32.mrf.mxu0 }
 0x531   : > { %1676 = shalt.err (!%p1673_p5)
}
 0x532   : > { %s1677_s6 = scalar_lea.hbm %s2027_s26, 1024  ;;  %s1681_s12 = scalar_lea.hbm %s2090_s4, 2048 }
 0x533   : > { %p1678_p6 = scmp.ne.s32.totalorder %s2027_s26, %s1677_s6  ;;  %p1682_p10 = scmp.lt.s32.totalorder %s2027_s26, %s2090_s4 }
 0x534   : > { %p1683_p11 = scmp.lt.s32.totalorder %s1681_s12, %s1677_s6 }
 0x535   : > { %p1679_p7 = pnand %p1678_p6, %p1824_p4 }
 0x536   : > { %p1684_p12 = por %p1683_p11, %p1682_p10 }
 0x537   : > { %p1680_p9 = pneg %p1679_p7 }
 0x539   : > { %p1685_p13 = pnand %p1684_p12, %p1680_p9 }
 0x53b   : > { %1688 = shalt.err (!%p1685_p13)
}
 0x53c   : > { %s1756_s22 = smov 128   ;;  %v1068_v1 = vpop.f32.mrf.mxu0  ;;  %s1757_s24 = smov 24   ;;  %vm1217_vm4 = vcmask 97280   ;;  %vm1219_vm5 = vcmask 130048   ;;  %vm1221_vm6 = vcmask 162816   ;;  %vm1223_vm7 = vcmask 195584  }
 0x53d   : > { %1559 = dma.vmem_to_hbm [thread:$0]  (%p1824_p4), %s2029_s21, 1024, %s2027_s26, %s2033_s29, %s1756_s22, %s1756_s22, %s1751_s10   ;;  %vm1225_vm8 = vcmask 228352   ;;  %vm1227_vm9 = vcmask 261120  }
 0x53e   : > { %1208 = vrot.lane.b32.xlu1 %v1068_v1, %s1757_s24  ;;  %v1545_v2 = vpop.f32.mrf.mxu0  ;;  %s1758_s5 = smov 28   ;;  %s276_s21 = scalar_lea.vmem %s2089_s3, %s1847_s30 }
 0x540   : > { %v1071_v3 = vpop.f32.mrf.mxu0 }
 0x542   : > { %v1546_v4 = vpop.f32.mrf.mxu0 }
 0x544   : > { %v1181_v5 = vpop.f32.mrf.mxu0 }
 0x545   : > { %1212 = vrot.lane.b32.xlu0 %v1181_v5, %s1758_s5 }
 0x546   : > { %v1557_v6 = vpop.f32.mrf.mxu0 }
 0x548   : > { %v1184_v7 = vpop.f32.mrf.mxu0 }
 0x54a   : > { %v1558_v8 = vpop.f32.mrf.mxu0 }
 0x558   : > { %v1189_v9 = vpop.permute.xlu1 %1188 }
 0x559   : > { %v1215_v12 = vsel %vm284_vm1, %v1929_v45, %v1189_v9 }
 0x560   : > { %v1193_v10 = vpop.permute.xlu1 %1192 }
 0x561   : > { %v1216_v13 = vsel %vm332_vm2, %v1215_v12, %v1193_v10 }
 0x568   : > { %v1197_v11 = vpop.permute.xlu0 %1196 }
 0x569   : > { %v1218_v15 = vsel %vm1217_vm4, %v1216_v13, %v1197_v11 }
 0x595   : > { %v1201_v18 = vpop.permute.xlu1 %1200 }
 0x596   : > { %v1220_v17 = vsel %vm1219_vm5, %v1218_v15, %v1201_v18 }
 0x59d   : > { %v1205_v14 = vpop.permute.xlu0 %1204 }
 0x59e   : > { %v1222_v19 = vsel %vm1221_vm6, %v1220_v17, %v1205_v14 }
 0x5b0   : > { %v1209_v16 = vpop.permute.xlu1 %1208 }
 0x5b1   : > { %v1224_v20 = vsel %vm1223_vm7, %v1222_v19, %v1209_v16 }
 0x5b7   : > { %v1213_v21 = vpop.permute.xlu0 %1212 }
 0x5b8   : > { %v1226_v22 = vsel %vm1225_vm8, %v1224_v20, %v1213_v21 }
 0x5b9   : > { %1228 = vst.msk [vmem:[%s276_s21] sm:$0xff] %vm1227_vm9, %v1226_v22 }
 0x5ba PF: > { %p1565_p4 = scmp.ge.s32.totalorder %s1739_s20, 2  ;;  %s1279_s26 = sand.u32 1, %s1719_s15  }
 0x5bb   : > { %s1280_s29 = scalar_lea.sflag [#allocation3], %s1279_s26 }
 0x5bc   : > { %p1562_p0 = pnand %p1565_p4, %p1831_p8 }
 0x5be   : > { %p1563_p1 = pneg %p1562_p0 }
 0x5c0   : > { %1714 = dma.done.wait (%p1563_p1), %s1280_s29, 1024  }
 0x5c1   : > { %1716 = vsyncadd (%p1563_p1), %s1280_s29, 4294966272  ;;  %s18_s20 = sadd.s32 1, %s1739_s20   ;;  %s2093_s15 = smov %s1723_s16 }
 0x5c2   : > { %p15_p2 = scmp.ge.s32.totalorder %s18_s20, 4   ;;  %s2094_s16 = smov %s1727_s17 }
 0x5c3   : > { %s2095_s17 = smov %s1837_s28  ;;  %s2096_s18 = smov %s1735_s19 }
 0x5c4   : > { %s2097_s19 = smov %s2099_s23  ;;  %17 = sbr.rel (!%p15_p2) target bundleno = 4 (0x4), region = 92 }
 0x5c9   :  { %1285 = vsyncpa [#allocation3], 1 }
 0x5ca   :  { %1287 = vsyncpa [#allocation3 + $0x1], 1 }

</bundles_post_ra>
